<compile_context>
chip_gen: v7x
topology: tpu7x:2x2x1
jax: 0.10.0
libtpu: 0.0.40
codegen_flags: <defaults>
</compile_context>

<pallas_src>
import functools

import jax
import jax.numpy as jnp
from jax.experimental import pallas as pl
from jax.experimental.pallas import tpu as pltpu


def _mlp_kernel(x_ref, w1_ref, b1_ref, w2_ref, b2_ref, w3_ref, b3_ref, o_ref):
    # One batch tile per grid step.  All three matmuls run bf16 on the MXU with
    # f32 accumulation; bias-add / ReLU in f32, re-cast to bf16 between layers.
    x = x_ref[...]                                                     # bf16 (TB, in_f)
    h1 = jnp.dot(x, w1_ref[...], preferred_element_type=jnp.float32) + b1_ref[...]
    h1 = jnp.maximum(h1, 0.0).astype(jnp.bfloat16)
    h2 = jnp.dot(h1, w2_ref[...], preferred_element_type=jnp.float32) + b2_ref[...]
    h2 = jnp.maximum(h2, 0.0).astype(jnp.bfloat16)
    out = jnp.dot(h2, w3_ref[...], preferred_element_type=jnp.float32) + b3_ref[...]
    o_ref[...] = out.astype(o_ref.dtype)                               # lane-dense (TB, 128)


@functools.partial(jax.jit, static_argnames=("num_classes",))
def ann_forward(x, params, *, num_classes):
    """x: (B, C, H, W) float32.  Returns logits (B, num_classes) float32."""
    w1, b1, w2, b2, w3, b3 = params      # weights bf16 [in, out]; biases f32 (1, out)
    B = x.shape[0]
    x2d = x.reshape(B, -1).astype(jnp.bfloat16)   # matches torch x.view(x.size(0), -1)
    in_f = x2d.shape[1]
    ncp = w3.shape[1]                              # lane-padded num_classes (multiple of 128)

    # Batch tiling: 128-row tiles for real batches; small batches run one compact tile
    # (padded to a multiple of 16 for bf16 sublane packing).  Extra rows are zeros.
    if B > 128:
        TB = 128
    else:
        TB = max(16, ((B + 15) // 16) * 16)
    Bp = ((B + TB - 1) // TB) * TB
    if Bp != B:
        x2d = jnp.pad(x2d, ((0, Bp - B), (0, 0)))
    grid = (Bp // TB,)

    flops = 2 * Bp * (in_f * w1.shape[1] + w2.shape[0] * w2.shape[1] + w3.shape[0] * ncp)
    bytes_accessed = (
        x2d.size * 2                                   # bf16 activations in
        + (w1.size + w2.size + w3.size) * 2            # bf16 weights
        + (b1.size + b2.size + b3.size) * 4            # f32 biases
        + Bp * ncp * 4                                 # f32 logits out
    )
    cost = pl.CostEstimate(flops=flops, transcendentals=0, bytes_accessed=bytes_accessed)

    out = pl.pallas_call(
        _mlp_kernel,
        out_shape=jax.ShapeDtypeStruct((Bp, ncp), jnp.float32),
        grid=grid,
        in_specs=[
            pl.BlockSpec((TB, in_f), lambda i: (i, 0)),    # activation tile marches over batch
            pl.BlockSpec(w1.shape, lambda i: (0, 0)),      # weights: constant block index ->
            pl.BlockSpec(b1.shape, lambda i: (0, 0)),      # fetched once, stay resident
            pl.BlockSpec(w2.shape, lambda i: (0, 0)),
            pl.BlockSpec(b2.shape, lambda i: (0, 0)),
            pl.BlockSpec(w3.shape, lambda i: (0, 0)),
            pl.BlockSpec(b3.shape, lambda i: (0, 0)),
        ],
        out_specs=pl.BlockSpec((TB, ncp), lambda i: (i, 0)),
        compiler_params=pltpu.CompilerParams(
            dimension_semantics=("parallel",),             # v7x: split batch across 2 TCs
            vmem_limit_bytes=32 << 20,                     # footprint ~2 MiB; leave headroom
        ),
        cost_estimate=cost,
    )(x2d, w1, b1, w2, b2, w3, b3)

    return out[:B, :num_classes]


def init_params(key, input_size, num_classes, *, lane=128):
    """Mimics nn.Linear's U(-1/sqrt(fan_in), 1/sqrt(fan_in)) init.

    Weights stored as bf16 [in, out] (transpose of torch's [out, in]); biases f32 (1, out).
    fc3's output dim is zero-padded up to a multiple of 128 lanes for dense stores.
    """
    def linear(key, fan_in, fan_out):
        kw, kb = jax.random.split(key)
        bound = 1.0 / jnp.sqrt(jnp.float32(fan_in))
        w = jax.random.uniform(kw, (fan_in, fan_out), jnp.float32, -bound, bound)
        b = jax.random.uniform(kb, (1, fan_out), jnp.float32, -bound, bound)
        return w, b

    k1, k2, k3 = jax.random.split(key, 3)
    w1, b1 = linear(k1, input_size, 512)
    w2, b2 = linear(k2, 512, 256)
    w3, b3 = linear(k3, 256, num_classes)

    ncp = ((num_classes + lane - 1) // lane) * lane
    w3 = jnp.pad(w3, ((0, 0), (0, ncp - num_classes)))
    b3 = jnp.pad(b3, ((0, 0), (0, ncp - num_classes)))

    return (w1.astype(jnp.bfloat16), b1,
            w2.astype(jnp.bfloat16), b2,
            w3.astype(jnp.bfloat16), b3)


if __name__ == "__main__":
    key = jax.random.PRNGKey(0)
    kx, kp = jax.random.split(key)

    B, C, H, W = 2, 4, 16, 16          # flattened input_size = 1024
    input_size = C * H * W
    num_classes = 10

    x = jax.random.normal(kx, (B, C, H, W), jnp.float32)
    params = init_params(kp, input_size, num_classes)

    logits = ann_forward(x, params, num_classes=num_classes)
    jax.block_until_ready(logits)

    # Reference in plain JAX, replicating the kernel's bf16-in / f32-accumulate math.
    w1, b1, w2, b2, w3, b3 = params
    x2d = x.reshape(B, -1).astype(jnp.bfloat16).astype(jnp.float32)
    h1 = jnp.maximum(x2d @ w1.astype(jnp.float32) + b1, 0.0)
    h1 = h1.astype(jnp.bfloat16).astype(jnp.float32)
    h2 = jnp.maximum(h1 @ w2.astype(jnp.float32) + b2, 0.0)
    h2 = h2.astype(jnp.bfloat16).astype(jnp.float32)
    ref = (h2 @ w3.astype(jnp.float32) + b3)[:, :num_classes]

    assert logits.shape == (B, num_classes)
    assert jnp.allclose(logits, ref, atol=1e-2, rtol=2e-2), (
        float(jnp.max(jnp.abs(logits - ref))))

    print("KERNEL_OK")
</pallas_src>

<mosaic_0001>
module attributes {stable_mosaic.version = 11 : i64} {
  func.func @_mlp_kernel(%arg0: i32, %arg1: memref<16x1024xbf16, #tpu.memory_space<vmem>>, %arg2: memref<1024x512xbf16, #tpu.memory_space<vmem>>, %arg3: memref<1x512xf32, #tpu.memory_space<vmem>>, %arg4: memref<512x256xbf16, #tpu.memory_space<vmem>>, %arg5: memref<1x256xf32, #tpu.memory_space<vmem>>, %arg6: memref<256x128xbf16, #tpu.memory_space<vmem>>, %arg7: memref<1x128xf32, #tpu.memory_space<vmem>>, %arg8: memref<16x128xf32, #tpu.memory_space<vmem>>) attributes {dimension_semantics = [#tpu.dimension_semantics<parallel>], iteration_bounds = array<i64: 1>, scalar_prefetch = 0 : i64, scratch_operands = 0 : i64, tpu.core_type = #tpu.core_type<tc>, window_params = [{transform_indices = @transform_0, window_bounds = array<i64: 16, 1024>}, {pipeline_mode = #tpu.pipeline_mode<synchronous>, transform_indices = @transform_1, window_bounds = array<i64: 1024, 512>}, {pipeline_mode = #tpu.pipeline_mode<synchronous>, transform_indices = @transform_2, window_bounds = array<i64: 1, 512>}, {pipeline_mode = #tpu.pipeline_mode<synchronous>, transform_indices = @transform_3, window_bounds = array<i64: 512, 256>}, {pipeline_mode = #tpu.pipeline_mode<synchronous>, transform_indices = @transform_4, window_bounds = array<i64: 1, 256>}, {pipeline_mode = #tpu.pipeline_mode<synchronous>, transform_indices = @transform_5, window_bounds = array<i64: 256, 128>}, {pipeline_mode = #tpu.pipeline_mode<synchronous>, transform_indices = @transform_6, window_bounds = array<i64: 1, 128>}, {transform_indices = @transform_7, window_bounds = array<i64: 16, 128>}]} {
    %c0 = arith.constant 0 : index
    %c0_0 = arith.constant 0 : index
    %0 = vector.load %arg1[%c0, %c0_0] : memref<16x1024xbf16, #tpu.memory_space<vmem>>, vector<16x1024xbf16>
    %c0_1 = arith.constant 0 : index
    %c0_2 = arith.constant 0 : index
    %1 = vector.load %arg2[%c0_1, %c0_2] : memref<1024x512xbf16, #tpu.memory_space<vmem>>, vector<1024x512xbf16>
    %cst = arith.constant dense<0.000000e+00> : vector<16x512xf32>
    %2 = tpu.matmul %0, %1, %cst {dimension_numbers = #tpu.dot_dimension_numbers<[1], [0], [0], [1], [0, 0, 1, 1], [], []>} : vector<16x1024xbf16>, vector<1024x512xbf16>, vector<16x512xf32> -> vector<16x512xf32>
    %c0_3 = arith.constant 0 : index
    %c0_4 = arith.constant 0 : index
    %3 = vector.load %arg3[%c0_3, %c0_4] : memref<1x512xf32, #tpu.memory_space<vmem>>, vector<1x512xf32>
    %4 = vector.broadcast %3 : vector<1x512xf32> to vector<16x512xf32>
    %5 = arith.addf %2, %4 : vector<16x512xf32>
    %cst_5 = arith.constant 0.000000e+00 : f32
    %6 = vector.broadcast %cst_5 : f32 to vector<16x512xf32>
    %7 = arith.maximumf %5, %6 : vector<16x512xf32>
    %8 = arith.truncf %7 : vector<16x512xf32> to vector<16x512xbf16>
    %c0_6 = arith.constant 0 : index
    %c0_7 = arith.constant 0 : index
    %9 = vector.load %arg4[%c0_6, %c0_7] : memref<512x256xbf16, #tpu.memory_space<vmem>>, vector<512x256xbf16>
    %cst_8 = arith.constant dense<0.000000e+00> : vector<16x256xf32>
    %10 = tpu.matmul %8, %9, %cst_8 {dimension_numbers = #tpu.dot_dimension_numbers<[1], [0], [0], [1], [0, 0, 1, 1], [], []>} : vector<16x512xbf16>, vector<512x256xbf16>, vector<16x256xf32> -> vector<16x256xf32>
    %c0_9 = arith.constant 0 : index
    %c0_10 = arith.constant 0 : index
    %11 = vector.load %arg5[%c0_9, %c0_10] : memref<1x256xf32, #tpu.memory_space<vmem>>, vector<1x256xf32>
    %12 = vector.broadcast %11 : vector<1x256xf32> to vector<16x256xf32>
    %13 = arith.addf %10, %12 : vector<16x256xf32>
    %cst_11 = arith.constant 0.000000e+00 : f32
    %14 = vector.broadcast %cst_11 : f32 to vector<16x256xf32>
    %15 = arith.maximumf %13, %14 : vector<16x256xf32>
    %16 = arith.truncf %15 : vector<16x256xf32> to vector<16x256xbf16>
    %c0_12 = arith.constant 0 : index
    %c0_13 = arith.constant 0 : index
    %17 = vector.load %arg6[%c0_12, %c0_13] : memref<256x128xbf16, #tpu.memory_space<vmem>>, vector<256x128xbf16>
    %cst_14 = arith.constant dense<0.000000e+00> : vector<16x128xf32>
    %18 = tpu.matmul %16, %17, %cst_14 {dimension_numbers = #tpu.dot_dimension_numbers<[1], [0], [0], [1], [0, 0, 1, 1], [], []>} : vector<16x256xbf16>, vector<256x128xbf16>, vector<16x128xf32> -> vector<16x128xf32>
    %c0_15 = arith.constant 0 : index
    %c0_16 = arith.constant 0 : index
    %19 = vector.load %arg7[%c0_15, %c0_16] : memref<1x128xf32, #tpu.memory_space<vmem>>, vector<1x128xf32>
    %20 = vector.broadcast %19 : vector<1x128xf32> to vector<16x128xf32>
    %21 = arith.addf %18, %20 : vector<16x128xf32>
    %c0_17 = arith.constant 0 : index
    %c0_18 = arith.constant 0 : index
    %22 = vector.load %arg8[%c0_17, %c0_18] : memref<16x128xf32, #tpu.memory_space<vmem>>, vector<16x128xf32>
    tpu.vector_store %arg8[%c0_17, %c0_18], %21 {strides = array<i32>} : memref<16x128xf32, #tpu.memory_space<vmem>>, vector<16x128xf32>,
    return
  }
  func.func @transform_0(%arg0: i32) -> (i32, i32) {
    %c0_i32 = arith.constant 0 : i32
    %c0_i32_0 = arith.constant 0 : i32
    return %arg0, %c0_i32 : i32, i32
  }
  func.func @transform_1(%arg0: i32) -> (i32, i32) {
    %c0_i32 = arith.constant 0 : i32
    %c0_i32_0 = arith.constant 0 : i32
    %c0_i32_1 = arith.constant 0 : i32
    return %c0_i32, %c0_i32_0 : i32, i32
  }
  func.func @transform_2(%arg0: i32) -> (i32, i32) {
    %c0_i32 = arith.constant 0 : i32
    %c0_i32_0 = arith.constant 0 : i32
    %c0_i32_1 = arith.constant 0 : i32
    return %c0_i32, %c0_i32_0 : i32, i32
  }
  func.func @transform_3(%arg0: i32) -> (i32, i32) {
    %c0_i32 = arith.constant 0 : i32
    %c0_i32_0 = arith.constant 0 : i32
    %c0_i32_1 = arith.constant 0 : i32
    return %c0_i32, %c0_i32_0 : i32, i32
  }
  func.func @transform_4(%arg0: i32) -> (i32, i32) {
    %c0_i32 = arith.constant 0 : i32
    %c0_i32_0 = arith.constant 0 : i32
    %c0_i32_1 = arith.constant 0 : i32
    return %c0_i32, %c0_i32_0 : i32, i32
  }
  func.func @transform_5(%arg0: i32) -> (i32, i32) {
    %c0_i32 = arith.constant 0 : i32
    %c0_i32_0 = arith.constant 0 : i32
    %c0_i32_1 = arith.constant 0 : i32
    return %c0_i32, %c0_i32_0 : i32, i32
  }
  func.func @transform_6(%arg0: i32) -> (i32, i32) {
    %c0_i32 = arith.constant 0 : i32
    %c0_i32_0 = arith.constant 0 : i32
    %c0_i32_1 = arith.constant 0 : i32
    return %c0_i32, %c0_i32_0 : i32, i32
  }
  func.func @transform_7(%arg0: i32) -> (i32, i32) {
    %c0_i32 = arith.constant 0 : i32
    %c0_i32_0 = arith.constant 0 : i32
    return %arg0, %c0_i32 : i32, i32
  }
}

</mosaic_0001>

<bundles_post_ra>
// kernel: ann_forward.1
= control target key start
LH: loop header
LB: loop body
LE: loop exit
PB: predicated region body
PF: predicated region fallthrough
CT: control target
= control target key end

     0   :  { %12 = vsyncpa [#allocation3], 0  ;;  %s3867_s0 = inlined_call_operand.vmem [shape: bf16[16,1024], index: 0, kind: input, shape index: {}]   ;;  %s3868_s1 = inlined_call_operand.hbm [shape: bf16[1024,512], index: 1, kind: input, shape index: {}]   ;;  %s3869_s2 = inlined_call_operand.vmem [shape: f32[1,512], index: 2, kind: input, shape index: {}]   ;;  %s3870_s3 = inlined_call_operand.hbm [shape: bf16[512,256], index: 3, kind: input, shape index: {}]   ;;  %s3871_s4 = inlined_call_operand.vmem [shape: f32[1,256], index: 4, kind: input, shape index: {}]   ;;  %s3872_s5 = inlined_call_operand.vmem [shape: bf16[256,128], index: 5, kind: input, shape index: {}]   ;;  %s3873_s6 = inlined_call_operand.vmem [shape: f32[1,128], index: 6, kind: input, shape index: {}]   ;;  %s3874_s7 = inlined_call_operand.vmem [shape: f32[16,128], index: 7, kind: output, shape index: {}]  }
   0x1   :  { %13 = vsyncpa [#allocation5], 0  ;;  %s3646_s24 = smov [#allocation2]   ;;  %s3598_s28 = scalar_lea.hbm %s3868_s1, 32768 }
   0x2   :  { %s21_s25 = sshll.u32 %s3646_s24, 4  ;;  %p3599_p0 = scmp.ne.s32.totalorder %s3868_s1, %s3598_s28  ;;  %s22_s25 = int_to_ptr.vmem [resolvable:$true] %s21_s25 }
   0x3   :  { %p3602_p1 = scmp.lt.u32.totalorder %s3598_s28, %s3868_s1 }
   0x5   :  { %p3604_p2 = pnand %p3602_p1, %p3599_p0 }
   0x7   :  { %3607 = shalt.err (!%p3604_p2)
}
   0x8   :  { %s3608_s10 = scalar_lea.vmem %s22_s25, 32768  ;;  %p3613_p4 = scmp.lt.s32.totalorder %s22_s25, %s22_s25 }
   0x9   :  { %p3609_p3 = scmp.ne.s32.totalorder %s22_s25, %s3608_s10  ;;  %p3614_p5 = scmp.lt.s32.totalorder %s3608_s10, %s3608_s10 }
   0xb   :  { %p3615_p6 = por %p3614_p5, %p3613_p4 }
   0xd   :  { %p3616_p7 = pnand %p3615_p6, %p3609_p3 }
   0xf   :  { %3619 = shalt.err (!%p3616_p7)
}
  0x10   :  { %s3647_s11 = smov 256   ;;  %s3648_s12 = smov 16  }
  0x11   :  { %27 = dma.hbm_to_vmem [thread:$0]  %s3868_s1, 32768, %s22_s25, [#allocation3], %s3647_s11, %s3647_s11, %s3648_s12  }
  0x12   :  { %s3649_s15 = smov [#allocation4]   ;;  %s3620_s19 = scalar_lea.hbm %s3870_s3, 8192 }
  0x13   :  { %s35_s16 = sshll.u32 %s3649_s15, 4  ;;  %p3621_p8 = scmp.ne.s32.totalorder %s3870_s3, %s3620_s19  ;;  %s36_s16 = int_to_ptr.vmem [resolvable:$true] %s35_s16 }
  0x14   :  { %p3624_p9 = scmp.lt.u32.totalorder %s3620_s19, %s3870_s3 }
  0x16   :  { %p3626_p10 = pnand %p3624_p9, %p3621_p8 }
  0x18   :  { %3629 = shalt.err (!%p3626_p10)
}
  0x19   :  { %s3630_s24 = scalar_lea.vmem %s36_s16, 8192  ;;  %p3635_p12 = scmp.lt.s32.totalorder %s36_s16, %s36_s16 }
  0x1a   :  { %p3631_p11 = scmp.ne.s32.totalorder %s36_s16, %s3630_s24  ;;  %p3636_p13 = scmp.lt.s32.totalorder %s3630_s24, %s3630_s24 }
  0x1c   :  { %p3637_p0 = por %p3636_p13, %p3635_p12 }
  0x1e   :  { %p3638_p1 = pnand %p3637_p0, %p3631_p11 }
  0x20   :  { %3641 = shalt.err (!%p3638_p1)
}
  0x21   :  { %s3650_s1 = smov 128   ;;  %s3651_s25 = smov 8  }
  0x22   :  { %41 = dma.hbm_to_vmem [thread:$0]  %s3870_s3, 8192, %s36_s16, [#allocation5], %s3650_s1, %s3650_s1, %s3651_s25  }
  0x23   :  { %3642 = dma.done.wait [#allocation3], 32768  }
  0x24   :  { %3643 = vsyncadd [#allocation3], 4294934528 }
  0x25   :  { %3644 = dma.done.wait [#allocation5], 8192  }
  0x26   :  { %3645 = vsyncadd [#allocation5], 4294959104  ;;  %v3102_v0 = vld [vmem:[#allocation2 + $0x4] ss:$16 sps:$4 sm:$0xff]   ;;  %v3106_v2 = vld [vmem:[#allocation2] ss:$16 sps:$4 sm:$0xff]  }
  0x27   :  { %v3104_v1 = vld [vmem:[#allocation2 + $0x204] ss:$16 sps:$4 sm:$0xff]   ;;  %1661 = vmatprep.subr.bf16.mxu1 %v3102_v0  ;;  %v3107_v3 = vld [vmem:[#allocation2 + $0x200] ss:$16 sps:$4 sm:$0xff]   ;;  %v56_v50 = vld [vmem:[%s3867_s0 + $0x8] sm:$0xff] }
  0x28   :  { %1704 = vmatprep.subr.bf16.mxu0 %v3104_v1  ;;  %v3108_v4 = vld [vmem:[#allocation2 + $0x24] ss:$16 sps:$4 sm:$0xff]   ;;  %1662 = vmatpush1.bf16.msra.mxu1 %v3106_v2  ;;  %v3112_v6 = vld [vmem:[#allocation2 + $0x20] ss:$16 sps:$4 sm:$0xff]   ;;  %v60_v51 = vld [vmem:[%s3867_s0 + $0x28] sm:$0xff] }
  0x29   :  { %1705 = vmatpush1.bf16.msra.mxu0 %v3107_v3  ;;  %v3110_v5 = vld [vmem:[#allocation2 + $0x224] ss:$16 sps:$4 sm:$0xff]   ;;  %1663 = vmatprep.subr.bf16.mxu1 %v3108_v4  ;;  %v3113_v7 = vld [vmem:[#allocation2 + $0x220] ss:$16 sps:$4 sm:$0xff]   ;;  %v3728_v55 = vcombine.high %v56_v50, %v60_v51 }
  0x2a   :  { %1706 = vmatprep.subr.bf16.mxu0 %v3110_v5  ;;  %v3114_v8 = vld [vmem:[#allocation2 + $0x44] ss:$16 sps:$4 sm:$0xff]   ;;  %v3118_v10 = vld [vmem:[#allocation2 + $0x40] ss:$16 sps:$4 sm:$0xff]  }
  0x2b   :  { %v3116_v9 = vld [vmem:[#allocation2 + $0x244] ss:$16 sps:$4 sm:$0xff]   ;;  %v3119_v11 = vld [vmem:[#allocation2 + $0x240] ss:$16 sps:$4 sm:$0xff]   ;;  %1736 = vmatprep.mubr.bf16.mxu0 %v3728_v55 }
  0x2c   :  { %1664 = vmatpush1.bf16.msra.mxu1 %v3112_v6  ;;  %v3120_v12 = vld [vmem:[#allocation2 + $0x64] ss:$16 sps:$4 sm:$0xff]   ;;  %v3124_v14 = vld [vmem:[#allocation2 + $0x60] ss:$16 sps:$4 sm:$0xff]  }
  0x2d   :  { %1707 = vmatpush1.bf16.msra.mxu0 %v3113_v7  ;;  %1665 = vmatprep.subr.bf16.mxu1 %v3114_v8  ;;  %v3122_v13 = vld [vmem:[#allocation2 + $0x264] ss:$16 sps:$4 sm:$0xff]   ;;  %v3125_v15 = vld [vmem:[#allocation2 + $0x260] ss:$16 sps:$4 sm:$0xff]   ;;  %v3203_v7 = vld [vmem:[#allocation2 + $0xc] ss:$16 sps:$4 sm:$0xff]  }
  0x2e   :  { %1708 = vmatprep.subr.bf16.mxu0 %v3116_v9  ;;  %v3126_v16 = vld [vmem:[#allocation2 + $0x84] ss:$16 sps:$4 sm:$0xff]   ;;  %v3130_v18 = vld [vmem:[#allocation2 + $0x80] ss:$16 sps:$4 sm:$0xff]   ;;  %v3733_v9 = vcombine.low %v56_v50, %v60_v51  ;;  %v3255_v50 = vld [vmem:[#allocation2 + $0x128] ss:$16 sps:$4 sm:$0xff]  }
  0x2f   :  { %v3128_v17 = vld [vmem:[#allocation2 + $0x284] ss:$16 sps:$4 sm:$0xff]   ;;  %v3131_v19 = vld [vmem:[#allocation2 + $0x280] ss:$16 sps:$4 sm:$0xff]  }
  0x30   :  { %1666 = vmatpush1.bf16.msra.mxu1 %v3118_v10  ;;  %v3132_v20 = vld [vmem:[#allocation2 + $0xa4] ss:$16 sps:$4 sm:$0xff]   ;;  %v3136_v22 = vld [vmem:[#allocation2 + $0xa0] ss:$16 sps:$4 sm:$0xff]  }
  0x31   :  { %1709 = vmatpush1.bf16.msra.mxu0 %v3119_v11  ;;  %1667 = vmatprep.subr.bf16.mxu1 %v3120_v12  ;;  %v3134_v21 = vld [vmem:[#allocation2 + $0x2a4] ss:$16 sps:$4 sm:$0xff]   ;;  %v3137_v23 = vld [vmem:[#allocation2 + $0x2a0] ss:$16 sps:$4 sm:$0xff]   ;;  %v3201_v11 = vld [vmem:[#allocation2 + $0x8] ss:$16 sps:$4 sm:$0xff]  }
  0x32   :  { %1710 = vmatprep.subr.bf16.mxu0 %v3122_v13  ;;  %v3138_v24 = vld [vmem:[#allocation2 + $0xc4] ss:$16 sps:$4 sm:$0xff]   ;;  %v3142_v26 = vld [vmem:[#allocation2 + $0xc0] ss:$16 sps:$4 sm:$0xff]   ;;  %v3209_v13 = vld [vmem:[#allocation2 + $0x2c] ss:$16 sps:$4 sm:$0xff]  }
  0x33   :  { %v3140_v25 = vld [vmem:[#allocation2 + $0x2c4] ss:$16 sps:$4 sm:$0xff]   ;;  %v3143_v27 = vld [vmem:[#allocation2 + $0x2c0] ss:$16 sps:$4 sm:$0xff]  }
  0x34   :  { %1668 = vmatpush1.bf16.msra.mxu1 %v3124_v14  ;;  %v3144_v28 = vld [vmem:[#allocation2 + $0xe4] ss:$16 sps:$4 sm:$0xff]   ;;  %v3148_v30 = vld [vmem:[#allocation2 + $0xe0] ss:$16 sps:$4 sm:$0xff]  }
  0x35   :  { %1711 = vmatpush1.bf16.msra.mxu0 %v3125_v15  ;;  %1669 = vmatprep.subr.bf16.mxu1 %v3126_v16  ;;  %v3146_v29 = vld [vmem:[#allocation2 + $0x2e4] ss:$16 sps:$4 sm:$0xff]   ;;  %v3149_v31 = vld [vmem:[#allocation2 + $0x2e0] ss:$16 sps:$4 sm:$0xff]   ;;  %v3207_v15 = vld [vmem:[#allocation2 + $0x28] ss:$16 sps:$4 sm:$0xff]  }
  0x36   :  { %1712 = vmatprep.subr.bf16.mxu0 %v3128_v17  ;;  %v3150_v32 = vld [vmem:[#allocation2 + $0x104] ss:$16 sps:$4 sm:$0xff]   ;;  %v3154_v34 = vld [vmem:[#allocation2 + $0x100] ss:$16 sps:$4 sm:$0xff]   ;;  %v3215_v17 = vld [vmem:[#allocation2 + $0x4c] ss:$16 sps:$4 sm:$0xff]  }
  0x37   :  { %v3152_v33 = vld [vmem:[#allocation2 + $0x304] ss:$16 sps:$4 sm:$0xff]   ;;  %v3155_v35 = vld [vmem:[#allocation2 + $0x300] ss:$16 sps:$4 sm:$0xff]  }
  0x38   :  { %1670 = vmatpush1.bf16.msra.mxu1 %v3130_v18  ;;  %v3156_v36 = vld [vmem:[#allocation2 + $0x124] ss:$16 sps:$4 sm:$0xff]   ;;  %v3160_v38 = vld [vmem:[#allocation2 + $0x120] ss:$16 sps:$4 sm:$0xff]  }
  0x39   :  { %1713 = vmatpush1.bf16.msra.mxu0 %v3131_v19  ;;  %1671 = vmatprep.subr.bf16.mxu1 %v3132_v20  ;;  %v3158_v37 = vld [vmem:[#allocation2 + $0x324] ss:$16 sps:$4 sm:$0xff]   ;;  %v3161_v39 = vld [vmem:[#allocation2 + $0x320] ss:$16 sps:$4 sm:$0xff]   ;;  %v3213_v19 = vld [vmem:[#allocation2 + $0x48] ss:$16 sps:$4 sm:$0xff]  }
  0x3a   :  { %1714 = vmatprep.subr.bf16.mxu0 %v3134_v21  ;;  %v3162_v40 = vld [vmem:[#allocation2 + $0x144] ss:$16 sps:$4 sm:$0xff]   ;;  %v3166_v42 = vld [vmem:[#allocation2 + $0x140] ss:$16 sps:$4 sm:$0xff]   ;;  %v3221_v21 = vld [vmem:[#allocation2 + $0x6c] ss:$16 sps:$4 sm:$0xff]  }
  0x3b   :  { %v3164_v41 = vld [vmem:[#allocation2 + $0x344] ss:$16 sps:$4 sm:$0xff]   ;;  %v3167_v43 = vld [vmem:[#allocation2 + $0x340] ss:$16 sps:$4 sm:$0xff]  }
  0x3c   :  { %1672 = vmatpush1.bf16.msra.mxu1 %v3136_v22  ;;  %v3168_v44 = vld [vmem:[#allocation2 + $0x164] ss:$16 sps:$4 sm:$0xff]   ;;  %v3172_v46 = vld [vmem:[#allocation2 + $0x160] ss:$16 sps:$4 sm:$0xff]  }
  0x3d   :  { %1715 = vmatpush1.bf16.msra.mxu0 %v3137_v23  ;;  %1673 = vmatprep.subr.bf16.mxu1 %v3138_v24  ;;  %v3170_v45 = vld [vmem:[#allocation2 + $0x364] ss:$16 sps:$4 sm:$0xff]   ;;  %v3173_v47 = vld [vmem:[#allocation2 + $0x360] ss:$16 sps:$4 sm:$0xff]   ;;  %v3219_v23 = vld [vmem:[#allocation2 + $0x68] ss:$16 sps:$4 sm:$0xff]  }
  0x3e   :  { %1716 = vmatprep.subr.bf16.mxu0 %v3140_v25  ;;  %v55_v48 = vld [vmem:[%s3867_s0] sm:$0xff]  ;;  %v3227_v25 = vld [vmem:[#allocation2 + $0x8c] ss:$16 sps:$4 sm:$0xff]  }
  0x3f   :  { %v59_v49 = vld [vmem:[%s3867_s0 + $0x20] sm:$0xff] }
  0x40   :  { %1674 = vmatpush1.bf16.msra.mxu1 %v3142_v26  ;;  %v3174_v52 = vld [vmem:[#allocation2 + $0x184] ss:$16 sps:$4 sm:$0xff]   ;;  %v2690_v53 = vcombine.high %v55_v48, %v59_v49  ;;  %v3178_v56 = vld [vmem:[#allocation2 + $0x180] ss:$16 sps:$4 sm:$0xff]   ;;  %v3731_v8 = vcombine.low %v55_v48, %v59_v49  ;;  %v3257_v48 = vld [vmem:[#allocation2 + $0x12c] ss:$16 sps:$4 sm:$0xff]  }
  0x41   :  { %1717 = vmatpush1.bf16.msra.mxu0 %v3143_v27  ;;  %1675 = vmatprep.subr.bf16.mxu1 %v3144_v28  ;;  %v3176_v54 = vld [vmem:[#allocation2 + $0x384] ss:$16 sps:$4 sm:$0xff]   ;;  %v3179_v57 = vld [vmem:[#allocation2 + $0x380] ss:$16 sps:$4 sm:$0xff]   ;;  %v3225_v27 = vld [vmem:[#allocation2 + $0x88] ss:$16 sps:$4 sm:$0xff]  }
  0x42   :  { %1718 = vmatprep.subr.bf16.mxu0 %v3146_v29  ;;  %1693 = vmatprep.mubr.bf16.mxu1 %v2690_v53  ;;  %v3180_v58 = vld [vmem:[#allocation2 + $0x1a4] ss:$16 sps:$4 sm:$0xff]   ;;  %v3184_v60 = vld [vmem:[#allocation2 + $0x1a0] ss:$16 sps:$4 sm:$0xff]   ;;  %v3233_v29 = vld [vmem:[#allocation2 + $0xac] ss:$16 sps:$4 sm:$0xff]  }
  0x43   :  { %v3182_v59 = vld [vmem:[#allocation2 + $0x3a4] ss:$16 sps:$4 sm:$0xff]   ;;  %v3185_v61 = vld [vmem:[#allocation2 + $0x3a0] ss:$16 sps:$4 sm:$0xff]  }
  0x44   :  { %1676 = vmatpush1.bf16.msra.mxu1 %v3148_v30  ;;  %v3186_v62 = vld [vmem:[#allocation2 + $0x1c4] ss:$16 sps:$4 sm:$0xff]   ;;  %v3190_v0 = vld [vmem:[#allocation2 + $0x1c0] ss:$16 sps:$4 sm:$0xff]  }
  0x45   :  { %1719 = vmatpush1.bf16.msra.mxu0 %v3149_v31  ;;  %1677 = vmatprep.subr.bf16.mxu1 %v3150_v32  ;;  %v3188_v63 = vld [vmem:[#allocation2 + $0x3c4] ss:$16 sps:$4 sm:$0xff]   ;;  %v3191_v1 = vld [vmem:[#allocation2 + $0x3c0] ss:$16 sps:$4 sm:$0xff]   ;;  %v3231_v31 = vld [vmem:[#allocation2 + $0xa8] ss:$16 sps:$4 sm:$0xff]  }
  0x46   :  { %1720 = vmatprep.subr.bf16.mxu0 %v3152_v33  ;;  %v3192_v2 = vld [vmem:[#allocation2 + $0x1e4] ss:$16 sps:$4 sm:$0xff]   ;;  %v3196_v4 = vld [vmem:[#allocation2 + $0x1e0] ss:$16 sps:$4 sm:$0xff]   ;;  %v3239_v33 = vld [vmem:[#allocation2 + $0xcc] ss:$16 sps:$4 sm:$0xff]  }
  0x47   :  { %v3194_v3 = vld [vmem:[#allocation2 + $0x3e4] ss:$16 sps:$4 sm:$0xff]   ;;  %v3197_v5 = vld [vmem:[#allocation2 + $0x3e0] ss:$16 sps:$4 sm:$0xff]  }
  0x48   :  { %1678 = vmatpush1.bf16.msra.mxu1 %v3154_v34  ;;  %v3200_v6 = vld [vmem:[#allocation2 + $0x404] ss:$16 sps:$4 sm:$0xff]   ;;  %v3198_v10 = vld [vmem:[#allocation2 + $0x400] ss:$16 sps:$4 sm:$0xff]  }
  0x49   :  { %1721 = vmatpush1.bf16.msra.mxu0 %v3155_v35  ;;  %1679 = vmatprep.subr.bf16.mxu1 %v3156_v36  ;;  %v3206_v12 = vld [vmem:[#allocation2 + $0x424] ss:$16 sps:$4 sm:$0xff]   ;;  %v3204_v14 = vld [vmem:[#allocation2 + $0x420] ss:$16 sps:$4 sm:$0xff]  }
  0x4a   :  { %1722 = vmatprep.subr.bf16.mxu0 %v3158_v37  ;;  %v3212_v16 = vld [vmem:[#allocation2 + $0x444] ss:$16 sps:$4 sm:$0xff]   ;;  %v3210_v18 = vld [vmem:[#allocation2 + $0x440] ss:$16 sps:$4 sm:$0xff]   ;;  %v3237_v37 = vld [vmem:[#allocation2 + $0xc8] ss:$16 sps:$4 sm:$0xff]  }
  0x4b   :  { %v3218_v20 = vld [vmem:[#allocation2 + $0x464] ss:$16 sps:$4 sm:$0xff]   ;;  %v3216_v22 = vld [vmem:[#allocation2 + $0x460] ss:$16 sps:$4 sm:$0xff]  }
  0x4c   :  { %1680 = vmatpush1.bf16.msra.mxu1 %v3160_v38  ;;  %v3224_v24 = vld [vmem:[#allocation2 + $0x484] ss:$16 sps:$4 sm:$0xff]   ;;  %v3222_v26 = vld [vmem:[#allocation2 + $0x480] ss:$16 sps:$4 sm:$0xff]  }
  0x4d   :  { %1723 = vmatpush1.bf16.msra.mxu0 %v3161_v39  ;;  %1681 = vmatprep.subr.bf16.mxu1 %v3162_v40  ;;  %v3230_v28 = vld [vmem:[#allocation2 + $0x4a4] ss:$16 sps:$4 sm:$0xff]   ;;  %v3228_v30 = vld [vmem:[#allocation2 + $0x4a0] ss:$16 sps:$4 sm:$0xff]   ;;  %v3245_v40 = vld [vmem:[#allocation2 + $0xec] ss:$16 sps:$4 sm:$0xff]  }
  0x4e   :  { %1724 = vmatprep.subr.bf16.mxu0 %v3164_v41  ;;  %v3236_v32 = vld [vmem:[#allocation2 + $0x4c4] ss:$16 sps:$4 sm:$0xff]   ;;  %v3234_v36 = vld [vmem:[#allocation2 + $0x4c0] ss:$16 sps:$4 sm:$0xff]  }
  0x4f   :  { %v3740_v34 = vld [vmem:[%s3867_s0 + $0x10] sm:$0xff] }
  0x50   :  { %1682 = vmatpush1.bf16.msra.mxu1 %v3166_v42  ;;  %v3745_v35 = vld [vmem:[%s3867_s0 + $0x30] sm:$0xff]  ;;  %v3243_v42 = vld [vmem:[#allocation2 + $0xe8] ss:$16 sps:$4 sm:$0xff]  }
  0x51   :  { %1725 = vmatpush1.bf16.msra.mxu0 %v3167_v43  ;;  %1683 = vmatprep.subr.bf16.mxu1 %v3168_v44  ;;  %v3749_v38 = vcombine.high %v3740_v34, %v3745_v35  ;;  %v3242_v39 = vld [vmem:[#allocation2 + $0x4e4] ss:$16 sps:$4 sm:$0xff]   ;;  %v3240_v41 = vld [vmem:[#allocation2 + $0x4e0] ss:$16 sps:$4 sm:$0xff]   ;;  %v3251_v44 = vld [vmem:[#allocation2 + $0x10c] ss:$16 sps:$4 sm:$0xff]  }
  0x52   :  { %1726 = vmatprep.subr.bf16.mxu0 %v3170_v45  ;;  %v3248_v43 = vld [vmem:[#allocation2 + $0x504] ss:$16 sps:$4 sm:$0xff]   ;;  %v3246_v45 = vld [vmem:[#allocation2 + $0x500] ss:$16 sps:$4 sm:$0xff]  }
  0x53   :  { %v3252_v49 = vld [vmem:[#allocation2 + $0x520] ss:$16 sps:$4 sm:$0xff]   ;;  %v3260_v51 = vld [vmem:[#allocation2 + $0x544] ss:$16 sps:$4 sm:$0xff]  }
  0x54   :  { %1684 = vmatpush1.bf16.msra.mxu1 %v3172_v46  ;;  %v3249_v46 = vld [vmem:[#allocation2 + $0x108] ss:$16 sps:$4 sm:$0xff]  }
  0x55   :  { %1727 = vmatpush1.bf16.msra.mxu0 %v3173_v47  ;;  %1685 = vmatprep.subr.bf16.mxu1 %v3174_v52  ;;  %v3254_v47 = vld [vmem:[#allocation2 + $0x524] ss:$16 sps:$4 sm:$0xff]   ;;  %v3263_v52 = vld [vmem:[#allocation2 + $0x14c] ss:$16 sps:$4 sm:$0xff]  }
  0x56   :  { %1728 = vmatprep.subr.bf16.mxu0 %v3176_v54  ;;  %v3261_v54 = vld [vmem:[#allocation2 + $0x148] ss:$16 sps:$4 sm:$0xff]  }
  0x58   :  { %1686 = vmatpush1.bf16.msra.mxu1 %v3178_v56  ;;  %v3266_v56 = vld [vmem:[#allocation2 + $0x564] ss:$16 sps:$4 sm:$0xff]  }
  0x59   :  { %1729 = vmatpush1.bf16.msra.mxu0 %v3179_v57  ;;  %1687 = vmatprep.subr.bf16.mxu1 %v3180_v58  ;;  %v3269_v57 = vld [vmem:[#allocation2 + $0x16c] ss:$16 sps:$4 sm:$0xff]   ;;  %v3264_v58 = vld [vmem:[#allocation2 + $0x560] ss:$16 sps:$4 sm:$0xff]  }
  0x5a   :  { %1730 = vmatprep.subr.bf16.mxu0 %v3182_v59  ;;  %v3267_v59 = vld [vmem:[#allocation2 + $0x168] ss:$16 sps:$4 sm:$0xff]  }
  0x5c   :  { %1688 = vmatpush1.bf16.msra.mxu1 %v3184_v60  ;;  %v3272_v60 = vld [vmem:[#allocation2 + $0x584] ss:$16 sps:$4 sm:$0xff]  }
  0x5d   :  { %1731 = vmatpush1.bf16.msra.mxu0 %v3185_v61  ;;  %1689 = vmatprep.subr.bf16.mxu1 %v3186_v62  ;;  %v3275_v61 = vld [vmem:[#allocation2 + $0x18c] ss:$16 sps:$4 sm:$0xff]   ;;  %v3270_v62 = vld [vmem:[#allocation2 + $0x580] ss:$16 sps:$4 sm:$0xff]  }
  0x5e   :  { %1732 = vmatprep.subr.bf16.mxu0 %v3188_v63  ;;  %v3273_v63 = vld [vmem:[#allocation2 + $0x188] ss:$16 sps:$4 sm:$0xff]  }
  0x60   :  { %1690 = vmatpush1.bf16.msra.mxu1 %v3190_v0  ;;  %v3278_v0 = vld [vmem:[#allocation2 + $0x5a4] ss:$16 sps:$4 sm:$0xff]  }
  0x61   :  { %1733 = vmatpush1.bf16.msra.mxu0 %v3191_v1  ;;  %1691 = vmatprep.subr.bf16.mxu1 %v3192_v2  ;;  %v3281_v1 = vld [vmem:[#allocation2 + $0x1ac] ss:$16 sps:$4 sm:$0xff]   ;;  %v3276_v2 = vld [vmem:[#allocation2 + $0x5a0] ss:$16 sps:$4 sm:$0xff]  }
  0x62   :  { %1734 = vmatprep.subr.bf16.mxu0 %v3194_v3  ;;  %v3279_v3 = vld [vmem:[#allocation2 + $0x1a8] ss:$16 sps:$4 sm:$0xff]  }
  0x64   :  { %1692 = vmatpush1.bf16.msra.mxu1 %v3196_v4  ;;  %v3284_v4 = vld [vmem:[#allocation2 + $0x5c4] ss:$16 sps:$4 sm:$0xff]  }
  0x65   :  { %1735 = vmatpush1.bf16.msra.mxu0 %v3197_v5  ;;  %1833 = vmatprep.subr.bf16.mxu1 %v3203_v7  ;;  %v3287_v5 = vld [vmem:[#allocation2 + $0x1cc] ss:$16 sps:$4 sm:$0xff]   ;;  %v3285_v7 = vld [vmem:[#allocation2 + $0x1c8] ss:$16 sps:$4 sm:$0xff]  }
  0x66   :  { %1747 = vmatprep.subr.bf16.mxu0 %v3200_v6  ;;  %v3282_v6 = vld [vmem:[#allocation2 + $0x5c0] ss:$16 sps:$4 sm:$0xff]  }
  0x67   :  { %1694 = vmatmul.mubr.bf16.vlgmr.msra.gmra.mrb[0].mxu1 %v3731_v8 }
  0x68   :  { %1737 = vmatmul.mubr.bf16.vlgmr.msra.gmra.mrb[0].mxu0 %v3733_v9  ;;  %1834 = vmatpush1.bf16.msra.mxu1 %v3201_v11  ;;  %v3293_v11 = vld [vmem:[#allocation2 + $0x1ec] ss:$16 sps:$4 sm:$0xff]  }
  0x69   :  { %1748 = vmatpush1.bf16.msra.mxu0 %v3198_v10  ;;  %1835 = vmatprep.subr.bf16.mxu1 %v3209_v13  ;;  %v3290_v10 = vld [vmem:[#allocation2 + $0x5e4] ss:$16 sps:$4 sm:$0xff]   ;;  %v3291_v13 = vld [vmem:[#allocation2 + $0x1e8] ss:$16 sps:$4 sm:$0xff]  }
  0x6a   :  { %1749 = vmatprep.subr.bf16.mxu0 %v3206_v12  ;;  %1865 = vmatprep.mubr.bf16.mxu1 %v2690_v53  ;;  %v3258_v53 = vld [vmem:[#allocation2 + $0x540] ss:$16 sps:$4 sm:$0xff]  }
  0x6b   :  { %1779 = vmatprep.mubr.bf16.mxu0 %v3749_v38  ;;  %v3288_v12 = vld [vmem:[#allocation2 + $0x5e0] ss:$16 sps:$4 sm:$0xff]  }
  0x6c   :  { %1836 = vmatpush1.bf16.msra.mxu1 %v3207_v15  ;;  %v3299_v15 = vld [vmem:[#allocation2 + $0x20c] ss:$16 sps:$4 sm:$0xff]  }
  0x6d   :  { %1750 = vmatpush1.bf16.msra.mxu0 %v3204_v14  ;;  %1837 = vmatprep.subr.bf16.mxu1 %v3215_v17  ;;  %v3296_v14 = vld [vmem:[#allocation2 + $0x604] ss:$16 sps:$4 sm:$0xff]   ;;  %v3294_v17 = vld [vmem:[#allocation2 + $0x600] ss:$16 sps:$4 sm:$0xff]  }
  0x6e   :  { %1751 = vmatprep.subr.bf16.mxu0 %v3212_v16  ;;  %v3754_v16 = vcombine.low %v3740_v34, %v3745_v35  ;;  %v3323_v34 = vld [vmem:[#allocation2 + $0x28c] ss:$16 sps:$4 sm:$0xff]   ;;  %v3318_v35 = vld [vmem:[#allocation2 + $0x680] ss:$16 sps:$4 sm:$0xff]  }
  0x70   :  { %1838 = vmatpush1.bf16.msra.mxu1 %v3213_v19  ;;  %v3302_v19 = vld [vmem:[#allocation2 + $0x624] ss:$16 sps:$4 sm:$0xff]  }
  0x71   :  { %1752 = vmatpush1.bf16.msra.mxu0 %v3210_v18  ;;  %1839 = vmatprep.subr.bf16.mxu1 %v3221_v21  ;;  %v3297_v18 = vld [vmem:[#allocation2 + $0x208] ss:$16 sps:$4 sm:$0xff]  }
  0x72   :  { %1753 = vmatprep.subr.bf16.mxu0 %v3218_v20  ;;  %v3305_v20 = vld [vmem:[#allocation2 + $0x22c] ss:$16 sps:$4 sm:$0xff]  }
  0x73   :  { %v3759_v21 = vld [vmem:[%s3867_s0 + $0x18] sm:$0xff] }
  0x74   :  { %1840 = vmatpush1.bf16.msra.mxu1 %v3219_v23  ;;  %v3300_v23 = vld [vmem:[#allocation2 + $0x620] ss:$16 sps:$4 sm:$0xff]  }
  0x75   :  { %1754 = vmatpush1.bf16.msra.mxu0 %v3216_v22  ;;  %1841 = vmatprep.subr.bf16.mxu1 %v3227_v25  ;;  %v3764_v22 = vld [vmem:[%s3867_s0 + $0x38] sm:$0xff] }
  0x76   :  { %1755 = vmatprep.subr.bf16.mxu0 %v3224_v24  ;;  %v3303_v24 = vld [vmem:[#allocation2 + $0x228] ss:$16 sps:$4 sm:$0xff]   ;;  %v3770_v25 = vcombine.high %v3759_v21, %v3764_v22 }
  0x78   :  { %1842 = vmatpush1.bf16.msra.mxu1 %v3225_v27  ;;  %v3311_v27 = vld [vmem:[#allocation2 + $0x24c] ss:$16 sps:$4 sm:$0xff]  }
  0x79   :  { %1756 = vmatpush1.bf16.msra.mxu0 %v3222_v26  ;;  %1843 = vmatprep.subr.bf16.mxu1 %v3233_v29  ;;  %v3308_v26 = vld [vmem:[#allocation2 + $0x644] ss:$16 sps:$4 sm:$0xff]   ;;  %v3309_v29 = vld [vmem:[#allocation2 + $0x248] ss:$16 sps:$4 sm:$0xff]  }
  0x7a   :  { %1757 = vmatprep.subr.bf16.mxu0 %v3230_v28  ;;  %v3306_v28 = vld [vmem:[#allocation2 + $0x640] ss:$16 sps:$4 sm:$0xff]  }
  0x7c   :  { %1844 = vmatpush1.bf16.msra.mxu1 %v3231_v31  ;;  %v3312_v31 = vld [vmem:[#allocation2 + $0x660] ss:$16 sps:$4 sm:$0xff]  }
  0x7d   :  { %1758 = vmatpush1.bf16.msra.mxu0 %v3228_v30  ;;  %1845 = vmatprep.subr.bf16.mxu1 %v3239_v33  ;;  %v3317_v30 = vld [vmem:[#allocation2 + $0x26c] ss:$16 sps:$4 sm:$0xff]   ;;  %v3320_v33 = vld [vmem:[#allocation2 + $0x684] ss:$16 sps:$4 sm:$0xff]  }
  0x7e   :  { %1759 = vmatprep.subr.bf16.mxu0 %v3236_v32  ;;  %v3315_v32 = vld [vmem:[#allocation2 + $0x268] ss:$16 sps:$4 sm:$0xff]  }
  0x80   :  { %1846 = vmatpush1.bf16.msra.mxu1 %v3237_v37  ;;  %v3329_v37 = vld [vmem:[#allocation2 + $0x2ac] ss:$16 sps:$4 sm:$0xff]  }
  0x81   :  { %1760 = vmatpush1.bf16.msra.mxu0 %v3234_v36  ;;  %1847 = vmatprep.subr.bf16.mxu1 %v3245_v40  ;;  %v3321_v36 = vld [vmem:[#allocation2 + $0x288] ss:$16 sps:$4 sm:$0xff]  }
  0x82   :  { %1761 = vmatprep.subr.bf16.mxu0 %v3242_v39  ;;  %v3324_v39 = vld [vmem:[#allocation2 + $0x6a0] ss:$16 sps:$4 sm:$0xff]   ;;  %v3327_v40 = vld [vmem:[#allocation2 + $0x2a8] ss:$16 sps:$4 sm:$0xff]  }
  0x84   :  { %1848 = vmatpush1.bf16.msra.mxu1 %v3243_v42  ;;  %v3335_v42 = vld [vmem:[#allocation2 + $0x2cc] ss:$16 sps:$4 sm:$0xff]  }
  0x85   :  { %1762 = vmatpush1.bf16.msra.mxu0 %v3240_v41  ;;  %1849 = vmatprep.subr.bf16.mxu1 %v3251_v44  ;;  %v3332_v41 = vld [vmem:[#allocation2 + $0x6c4] ss:$16 sps:$4 sm:$0xff]   ;;  %v3333_v44 = vld [vmem:[#allocation2 + $0x2c8] ss:$16 sps:$4 sm:$0xff]  }
  0x86   :  { %1763 = vmatprep.subr.bf16.mxu0 %v3248_v43  ;;  %v3330_v43 = vld [vmem:[#allocation2 + $0x6c0] ss:$16 sps:$4 sm:$0xff]  }
  0x88   :  { %1850 = vmatpush1.bf16.msra.mxu1 %v3249_v46  ;;  %v3341_v46 = vld [vmem:[#allocation2 + $0x2ec] ss:$16 sps:$4 sm:$0xff]  }
  0x89   :  { %1764 = vmatpush1.bf16.msra.mxu0 %v3246_v45  ;;  %1851 = vmatprep.subr.bf16.mxu1 %v3257_v48  ;;  %v3338_v45 = vld [vmem:[#allocation2 + $0x6e4] ss:$16 sps:$4 sm:$0xff]   ;;  %v3339_v48 = vld [vmem:[#allocation2 + $0x2e8] ss:$16 sps:$4 sm:$0xff]  }
  0x8a   :  { %1765 = vmatprep.subr.bf16.mxu0 %v3254_v47  ;;  %v3336_v47 = vld [vmem:[#allocation2 + $0x6e0] ss:$16 sps:$4 sm:$0xff]  }
  0x8c   :  { %1852 = vmatpush1.bf16.msra.mxu1 %v3255_v50  ;;  %v3347_v50 = vld [vmem:[#allocation2 + $0x30c] ss:$16 sps:$4 sm:$0xff]  }
  0x8d   :  { %1766 = vmatpush1.bf16.msra.mxu0 %v3252_v49  ;;  %1853 = vmatprep.subr.bf16.mxu1 %v3263_v52  ;;  %v3344_v49 = vld [vmem:[#allocation2 + $0x704] ss:$16 sps:$4 sm:$0xff]   ;;  %v3345_v52 = vld [vmem:[#allocation2 + $0x308] ss:$16 sps:$4 sm:$0xff]  }
  0x8e   :  { %1767 = vmatprep.subr.bf16.mxu0 %v3260_v51  ;;  %v3342_v51 = vld [vmem:[#allocation2 + $0x700] ss:$16 sps:$4 sm:$0xff]  }
  0x90   :  { %1854 = vmatpush1.bf16.msra.mxu1 %v3261_v54  ;;  %v3353_v54 = vld [vmem:[#allocation2 + $0x32c] ss:$16 sps:$4 sm:$0xff]  }
  0x91   :  { %1768 = vmatpush1.bf16.msra.mxu0 %v3258_v53  ;;  %1855 = vmatprep.subr.bf16.mxu1 %v3269_v57  ;;  %v3350_v53 = vld [vmem:[#allocation2 + $0x724] ss:$16 sps:$4 sm:$0xff]   ;;  %v3351_v57 = vld [vmem:[#allocation2 + $0x328] ss:$16 sps:$4 sm:$0xff]  }
  0x92   :  { %1769 = vmatprep.subr.bf16.mxu0 %v3266_v56  ;;  %v3348_v56 = vld [vmem:[#allocation2 + $0x720] ss:$16 sps:$4 sm:$0xff]  }
  0x94   :  { %1856 = vmatpush1.bf16.msra.mxu1 %v3267_v59  ;;  %v3359_v59 = vld [vmem:[#allocation2 + $0x34c] ss:$16 sps:$4 sm:$0xff]  }
  0x95   :  { %1770 = vmatpush1.bf16.msra.mxu0 %v3264_v58  ;;  %1857 = vmatprep.subr.bf16.mxu1 %v3275_v61  ;;  %v3356_v58 = vld [vmem:[#allocation2 + $0x744] ss:$16 sps:$4 sm:$0xff]   ;;  %v3357_v61 = vld [vmem:[#allocation2 + $0x348] ss:$16 sps:$4 sm:$0xff]  }
  0x96   :  { %1771 = vmatprep.subr.bf16.mxu0 %v3272_v60  ;;  %v3354_v60 = vld [vmem:[#allocation2 + $0x740] ss:$16 sps:$4 sm:$0xff]  }
  0x98   :  { %1858 = vmatpush1.bf16.msra.mxu1 %v3273_v63  ;;  %v3365_v63 = vld [vmem:[#allocation2 + $0x36c] ss:$16 sps:$4 sm:$0xff]  }
  0x99   :  { %1772 = vmatpush1.bf16.msra.mxu0 %v3270_v62  ;;  %1859 = vmatprep.subr.bf16.mxu1 %v3281_v1  ;;  %v3362_v62 = vld [vmem:[#allocation2 + $0x764] ss:$16 sps:$4 sm:$0xff]   ;;  %v3363_v1 = vld [vmem:[#allocation2 + $0x368] ss:$16 sps:$4 sm:$0xff]  }
  0x9a   :  { %1773 = vmatprep.subr.bf16.mxu0 %v3278_v0  ;;  %v3360_v0 = vld [vmem:[#allocation2 + $0x760] ss:$16 sps:$4 sm:$0xff]  }
  0x9c   :  { %1860 = vmatpush1.bf16.msra.mxu1 %v3279_v3  ;;  %v3371_v3 = vld [vmem:[#allocation2 + $0x38c] ss:$16 sps:$4 sm:$0xff]  }
  0x9d   :  { %1774 = vmatpush1.bf16.msra.mxu0 %v3276_v2  ;;  %1861 = vmatprep.subr.bf16.mxu1 %v3287_v5  ;;  %v3368_v2 = vld [vmem:[#allocation2 + $0x784] ss:$16 sps:$4 sm:$0xff]   ;;  %v3369_v5 = vld [vmem:[#allocation2 + $0x388] ss:$16 sps:$4 sm:$0xff]  }
  0x9e   :  { %1775 = vmatprep.subr.bf16.mxu0 %v3284_v4  ;;  %v3366_v4 = vld [vmem:[#allocation2 + $0x780] ss:$16 sps:$4 sm:$0xff]  }
  0xa0   :  { %1862 = vmatpush1.bf16.msra.mxu1 %v3285_v7  ;;  %v3377_v7 = vld [vmem:[#allocation2 + $0x3ac] ss:$16 sps:$4 sm:$0xff]  }
  0xa1   :  { %1776 = vmatpush1.bf16.msra.mxu0 %v3282_v6  ;;  %1863 = vmatprep.subr.bf16.mxu1 %v3293_v11  ;;  %v3374_v6 = vld [vmem:[#allocation2 + $0x7a4] ss:$16 sps:$4 sm:$0xff]   ;;  %v3375_v11 = vld [vmem:[#allocation2 + $0x3a8] ss:$16 sps:$4 sm:$0xff]  }
  0xa2   :  { %1777 = vmatprep.subr.bf16.mxu0 %v3290_v10  ;;  %v3372_v10 = vld [vmem:[#allocation2 + $0x7a0] ss:$16 sps:$4 sm:$0xff]  }
  0xa4   :  { %1864 = vmatpush1.bf16.msra.mxu1 %v3291_v13  ;;  %v3383_v13 = vld [vmem:[#allocation2 + $0x3cc] ss:$16 sps:$4 sm:$0xff]  }
  0xa5   :  { %1778 = vmatpush1.bf16.msra.mxu0 %v3288_v12  ;;  %1876 = vmatprep.subr.bf16.mxu1 %v3299_v15  ;;  %v3380_v12 = vld [vmem:[#allocation2 + $0x7c4] ss:$16 sps:$4 sm:$0xff]   ;;  %v3381_v15 = vld [vmem:[#allocation2 + $0x3c8] ss:$16 sps:$4 sm:$0xff]  }
  0xa6   :  { %1790 = vmatprep.subr.bf16.mxu0 %v3296_v14  ;;  %v3378_v14 = vld [vmem:[#allocation2 + $0x7c0] ss:$16 sps:$4 sm:$0xff]  }
  0xa7   :  { %1866 = vmatmul.mubr.bf16.vlgmr.msra.gmra.mrb[4].mxu1 %v3731_v8  ;;  %v3314_v8 = vld [vmem:[#allocation2 + $0x664] ss:$16 sps:$4 sm:$0xff]  }
  0xa8   :  { %1780 = vmatmul.mubr.bf16.vlgmr.msra.gmra.mrb[0].mxu0 %v3754_v16  ;;  %1877 = vmatpush1.bf16.msra.mxu1 %v3297_v18  ;;  %v3389_v18 = vld [vmem:[#allocation2 + $0x3ec] ss:$16 sps:$4 sm:$0xff]  }
  0xa9   :  { %1791 = vmatpush1.bf16.msra.mxu0 %v3294_v17  ;;  %1878 = vmatprep.subr.bf16.mxu1 %v3305_v20  ;;  %v3386_v17 = vld [vmem:[#allocation2 + $0x7e4] ss:$16 sps:$4 sm:$0xff]   ;;  %v3387_v20 = vld [vmem:[#allocation2 + $0x3e8] ss:$16 sps:$4 sm:$0xff]  }
  0xaa   :  { %1792 = vmatprep.subr.bf16.mxu0 %v3302_v19  ;;  %1822 = vmatprep.mubr.bf16.mxu0 %v3770_v25  ;;  %v3384_v19 = vld [vmem:[#allocation2 + $0x7e0] ss:$16 sps:$4 sm:$0xff]  }
  0xab   :  { %1908 = vmatprep.mubr.bf16.mxu1 %v3728_v55  ;;  %v3326_v55 = vld [vmem:[#allocation2 + $0x6a4] ss:$16 sps:$4 sm:$0xff]  }
  0xac   :  { %1879 = vmatpush1.bf16.msra.mxu1 %v3303_v24  ;;  %v3390_v24 = vld [vmem:[#allocation2 + $0x408] ss:$16 sps:$4 sm:$0xff]  }
  0xad   :  { %1793 = vmatpush1.bf16.msra.mxu0 %v3300_v23  ;;  %1880 = vmatprep.subr.bf16.mxu1 %v3311_v27  ;;  %v3392_v23 = vld [vmem:[#allocation2 + $0x40c] ss:$16 sps:$4 sm:$0xff]  }
  0xae   :  { %1794 = vmatprep.subr.bf16.mxu0 %v3308_v26  ;;  %v3776_v26 = vcombine.low %v3759_v21, %v3764_v22  ;;  %v3395_v27 = vld [vmem:[#allocation2 + $0x42c] ss:$16 sps:$4 sm:$0xff]   ;;  %v3489_v21 = vld [vmem:[#allocation4 + $0x10] ss:$8 sps:$4 sm:$0xff]  }
  0xaf   :  { %v3494_v22 = vld [vmem:[#allocation4 + $0x24] ss:$8 sps:$4 sm:$0xff]  }
  0xb0   :  { %1881 = vmatpush1.bf16.msra.mxu1 %v3309_v29  ;;  %v3488_v29 = vld [vmem:[#allocation4 + $0x4] ss:$8 sps:$4 sm:$0xff]  }
  0xb1   :  { %1795 = vmatpush1.bf16.msra.mxu0 %v3306_v28  ;;  %1882 = vmatprep.subr.bf16.mxu1 %v3317_v30  ;;  %v3486_v28 = vld [vmem:[#allocation4] ss:$8 sps:$4 sm:$0xff]   ;;  %v3491_v30 = vld [vmem:[#allocation4 + $0x14] ss:$8 sps:$4 sm:$0xff]  }
  0xb2   :  { %1796 = vmatprep.subr.bf16.mxu0 %v3314_v8  ;;  %v3393_v8 = vld [vmem:[#allocation2 + $0x428] ss:$16 sps:$4 sm:$0xff]  }
  0xb4   :  { %1883 = vmatpush1.bf16.msra.mxu1 %v3315_v32  ;;  %v3396_v32 = vld [vmem:[#allocation2 + $0x448] ss:$16 sps:$4 sm:$0xff]  }
  0xb5   :  { %1797 = vmatpush1.bf16.msra.mxu0 %v3312_v31  ;;  %1884 = vmatprep.subr.bf16.mxu1 %v3323_v34  ;;  %v3398_v31 = vld [vmem:[#allocation2 + $0x44c] ss:$16 sps:$4 sm:$0xff]   ;;  %v3399_v34 = vld [vmem:[#allocation2 + $0x468] ss:$16 sps:$4 sm:$0xff]  }
  0xb6   :  { %1798 = vmatprep.subr.bf16.mxu0 %v3320_v33  ;;  %v3401_v33 = vld [vmem:[#allocation2 + $0x46c] ss:$16 sps:$4 sm:$0xff]  }
  0xb8   :  { %1885 = vmatpush1.bf16.msra.mxu1 %v3321_v36  ;;  %v3497_v36 = vld [vmem:[#allocation4 + $0x34] ss:$8 sps:$4 sm:$0xff]  }
  0xb9   :  { %1799 = vmatpush1.bf16.msra.mxu0 %v3318_v35  ;;  %1886 = vmatprep.subr.bf16.mxu1 %v3329_v37  ;;  %v3404_v35 = vld [vmem:[#allocation2 + $0x48c] ss:$16 sps:$4 sm:$0xff]   ;;  %v3402_v37 = vld [vmem:[#allocation2 + $0x488] ss:$16 sps:$4 sm:$0xff]  }
  0xba   :  { %1800 = vmatprep.subr.bf16.mxu0 %v3326_v55  ;;  %v3500_v55 = vld [vmem:[#allocation4 + $0x44] ss:$8 sps:$4 sm:$0xff]  }
  0xbc   :  { %1887 = vmatpush1.bf16.msra.mxu1 %v3327_v40  ;;  %v3498_v40 = vld [vmem:[#allocation4 + $0x40] ss:$8 sps:$4 sm:$0xff]  }
  0xbd   :  { %1801 = vmatpush1.bf16.msra.mxu0 %v3324_v39  ;;  %1888 = vmatprep.subr.bf16.mxu1 %v3335_v42  ;;  %v3407_v39 = vld [vmem:[#allocation2 + $0x4ac] ss:$16 sps:$4 sm:$0xff]   ;;  %v3405_v42 = vld [vmem:[#allocation2 + $0x4a8] ss:$16 sps:$4 sm:$0xff]  }
  0xbe   :  { %1802 = vmatprep.subr.bf16.mxu0 %v3332_v41  ;;  %v3503_v41 = vld [vmem:[#allocation4 + $0x54] ss:$8 sps:$4 sm:$0xff]  }
  0xc0   :  { %1889 = vmatpush1.bf16.msra.mxu1 %v3333_v44  ;;  %v3501_v44 = vld [vmem:[#allocation4 + $0x50] ss:$8 sps:$4 sm:$0xff]  }
  0xc1   :  { %1803 = vmatpush1.bf16.msra.mxu0 %v3330_v43  ;;  %1890 = vmatprep.subr.bf16.mxu1 %v3341_v46  ;;  %v3410_v43 = vld [vmem:[#allocation2 + $0x4cc] ss:$16 sps:$4 sm:$0xff]   ;;  %v3408_v46 = vld [vmem:[#allocation2 + $0x4c8] ss:$16 sps:$4 sm:$0xff]  }
  0xc2   :  { %1804 = vmatprep.subr.bf16.mxu0 %v3338_v45  ;;  %v3506_v45 = vld [vmem:[#allocation4 + $0x64] ss:$8 sps:$4 sm:$0xff]  }
  0xc4   :  { %1891 = vmatpush1.bf16.msra.mxu1 %v3339_v48  ;;  %v3504_v48 = vld [vmem:[#allocation4 + $0x60] ss:$8 sps:$4 sm:$0xff]  }
  0xc5   :  { %1805 = vmatpush1.bf16.msra.mxu0 %v3336_v47  ;;  %1892 = vmatprep.subr.bf16.mxu1 %v3347_v50  ;;  %v3413_v47 = vld [vmem:[#allocation2 + $0x4ec] ss:$16 sps:$4 sm:$0xff]   ;;  %v3411_v50 = vld [vmem:[#allocation2 + $0x4e8] ss:$16 sps:$4 sm:$0xff]  }
  0xc6   :  { %1806 = vmatprep.subr.bf16.mxu0 %v3344_v49  ;;  %v3509_v49 = vld [vmem:[#allocation4 + $0x74] ss:$8 sps:$4 sm:$0xff]  }
  0xc8   :  { %1893 = vmatpush1.bf16.msra.mxu1 %v3345_v52  ;;  %v3507_v52 = vld [vmem:[#allocation4 + $0x70] ss:$8 sps:$4 sm:$0xff]  }
  0xc9   :  { %1807 = vmatpush1.bf16.msra.mxu0 %v3342_v51  ;;  %1894 = vmatprep.subr.bf16.mxu1 %v3353_v54  ;;  %v3416_v51 = vld [vmem:[#allocation2 + $0x50c] ss:$16 sps:$4 sm:$0xff]   ;;  %v3414_v54 = vld [vmem:[#allocation2 + $0x508] ss:$16 sps:$4 sm:$0xff]  }
  0xca   :  { %1808 = vmatprep.subr.bf16.mxu0 %v3350_v53  ;;  %v3512_v53 = vld [vmem:[#allocation4 + $0x84] ss:$8 sps:$4 sm:$0xff]  }
  0xcc   :  { %1895 = vmatpush1.bf16.msra.mxu1 %v3351_v57  ;;  %v3510_v57 = vld [vmem:[#allocation4 + $0x80] ss:$8 sps:$4 sm:$0xff]  }
  0xcd   :  { %1809 = vmatpush1.bf16.msra.mxu0 %v3348_v56  ;;  %1896 = vmatprep.subr.bf16.mxu1 %v3359_v59  ;;  %v3419_v56 = vld [vmem:[#allocation2 + $0x52c] ss:$16 sps:$4 sm:$0xff]   ;;  %v3417_v59 = vld [vmem:[#allocation2 + $0x528] ss:$16 sps:$4 sm:$0xff]  }
  0xce   :  { %1810 = vmatprep.subr.bf16.mxu0 %v3356_v58  ;;  %v3515_v58 = vld [vmem:[#allocation4 + $0x94] ss:$8 sps:$4 sm:$0xff]  }
  0xd0   :  { %1897 = vmatpush1.bf16.msra.mxu1 %v3357_v61  ;;  %v3513_v61 = vld [vmem:[#allocation4 + $0x90] ss:$8 sps:$4 sm:$0xff]  }
  0xd1   :  { %1811 = vmatpush1.bf16.msra.mxu0 %v3354_v60  ;;  %1898 = vmatprep.subr.bf16.mxu1 %v3365_v63  ;;  %v3422_v60 = vld [vmem:[#allocation2 + $0x54c] ss:$16 sps:$4 sm:$0xff]   ;;  %v3420_v63 = vld [vmem:[#allocation2 + $0x548] ss:$16 sps:$4 sm:$0xff]  }
  0xd2   :  { %1812 = vmatprep.subr.bf16.mxu0 %v3362_v62  ;;  %v3518_v62 = vld [vmem:[#allocation4 + $0xa4] ss:$8 sps:$4 sm:$0xff]  }
  0xd4   :  { %1899 = vmatpush1.bf16.msra.mxu1 %v3363_v1  ;;  %v3516_v1 = vld [vmem:[#allocation4 + $0xa0] ss:$8 sps:$4 sm:$0xff]  }
  0xd5   :  { %1813 = vmatpush1.bf16.msra.mxu0 %v3360_v0  ;;  %1900 = vmatprep.subr.bf16.mxu1 %v3371_v3  ;;  %v3425_v0 = vld [vmem:[#allocation2 + $0x56c] ss:$16 sps:$4 sm:$0xff]   ;;  %v3423_v3 = vld [vmem:[#allocation2 + $0x568] ss:$16 sps:$4 sm:$0xff]  }
  0xd6   :  { %1814 = vmatprep.subr.bf16.mxu0 %v3368_v2  ;;  %v3521_v2 = vld [vmem:[#allocation4 + $0xb4] ss:$8 sps:$4 sm:$0xff]  }
  0xd8   :  { %1901 = vmatpush1.bf16.msra.mxu1 %v3369_v5  ;;  %v3519_v5 = vld [vmem:[#allocation4 + $0xb0] ss:$8 sps:$4 sm:$0xff]  }
  0xd9   :  { %1815 = vmatpush1.bf16.msra.mxu0 %v3366_v4  ;;  %1902 = vmatprep.subr.bf16.mxu1 %v3377_v7  ;;  %v3428_v4 = vld [vmem:[#allocation2 + $0x58c] ss:$16 sps:$4 sm:$0xff]   ;;  %v3426_v7 = vld [vmem:[#allocation2 + $0x588] ss:$16 sps:$4 sm:$0xff]  }
  0xda   :  { %1816 = vmatprep.subr.bf16.mxu0 %v3374_v6  ;;  %v3524_v6 = vld [vmem:[#allocation4 + $0xc4] ss:$8 sps:$4 sm:$0xff]  }
  0xdc   :  { %1903 = vmatpush1.bf16.msra.mxu1 %v3375_v11  ;;  %v3522_v11 = vld [vmem:[#allocation4 + $0xc0] ss:$8 sps:$4 sm:$0xff]  }
  0xdd   :  { %1817 = vmatpush1.bf16.msra.mxu0 %v3372_v10  ;;  %1904 = vmatprep.subr.bf16.mxu1 %v3383_v13  ;;  %v3431_v10 = vld [vmem:[#allocation2 + $0x5ac] ss:$16 sps:$4 sm:$0xff]   ;;  %v3429_v13 = vld [vmem:[#allocation2 + $0x5a8] ss:$16 sps:$4 sm:$0xff]  }
  0xde   :  { %1818 = vmatprep.subr.bf16.mxu0 %v3380_v12  ;;  %v3527_v12 = vld [vmem:[#allocation4 + $0xd4] ss:$8 sps:$4 sm:$0xff]  }
  0xe0   :  { %1905 = vmatpush1.bf16.msra.mxu1 %v3381_v15  ;;  %v3525_v15 = vld [vmem:[#allocation4 + $0xd0] ss:$8 sps:$4 sm:$0xff]  }
  0xe1   :  { %1819 = vmatpush1.bf16.msra.mxu0 %v3378_v14  ;;  %1906 = vmatprep.subr.bf16.mxu1 %v3389_v18  ;;  %v3434_v14 = vld [vmem:[#allocation2 + $0x5cc] ss:$16 sps:$4 sm:$0xff]  }
  0xe2   :  { %1820 = vmatprep.subr.bf16.mxu0 %v3386_v17  ;;  %v3432_v17 = vld [vmem:[#allocation2 + $0x5c8] ss:$16 sps:$4 sm:$0xff]   ;;  %v3437_v18 = vld [vmem:[#allocation2 + $0x5ec] ss:$16 sps:$4 sm:$0xff]  }
  0xe4   :  { %1907 = vmatpush1.bf16.msra.mxu1 %v3387_v20  ;;  %v3440_v20 = vld [vmem:[#allocation2 + $0x60c] ss:$16 sps:$4 sm:$0xff]  }
  0xe5   :  { %1821 = vmatpush1.bf16.msra.mxu0 %v3384_v19  ;;  %1919 = vmatprep.subr.bf16.mxu1 %v3392_v23  ;;  %v3435_v19 = vld [vmem:[#allocation2 + $0x5e8] ss:$16 sps:$4 sm:$0xff]  }
  0xe6   :  { %2413 = vmatprep.subr.bf16.mxu0 %v3488_v29  ;;  %v3438_v23 = vld [vmem:[#allocation2 + $0x608] ss:$16 sps:$4 sm:$0xff]  }
  0xe7   :  { %1909 = vmatmul.mubr.bf16.vlgmr.msra.gmra.mrb[4].mxu1 %v3733_v9  ;;  %v3492_v9 = vld [vmem:[#allocation4 + $0x20] ss:$8 sps:$4 sm:$0xff]  }
  0xe8   :  { %1823 = vmatmul.mubr.bf16.vlgmr.msra.gmra.mrb[0].mxu0 %v3776_v26  ;;  %1920 = vmatpush1.bf16.msra.mxu1 %v3390_v24  ;;  %v3443_v24 = vld [vmem:[#allocation2 + $0x62c] ss:$16 sps:$4 sm:$0xff]   ;;  %v3444_v29 = vld [vmem:[#allocation2 + $0x648] ss:$16 sps:$4 sm:$0xff]  }
  0xe9   :  { %1951 = vmatprep.mubr.bf16.mxu1 %v3749_v38  ;;  %1921 = vmatprep.subr.bf16.mxu1 %v3395_v27  ;;  %v3495_v38 = vld [vmem:[#allocation4 + $0x30] ss:$8 sps:$4 sm:$0xff]  }
  0xea   :  { %2414 = vmatpush1.bf16.msra.mxu0 %v3486_v28  ;;  %v3441_v27 = vld [vmem:[#allocation2 + $0x628] ss:$16 sps:$4 sm:$0xff]   ;;  %v3446_v28 = vld [vmem:[#allocation2 + $0x64c] ss:$16 sps:$4 sm:$0xff]  }
  0xeb   :  { %2415 = vmatprep.subr.bf16.mxu0 %v3491_v30  ;;  %v3447_v30 = vld [vmem:[#allocation2 + $0x668] ss:$16 sps:$4 sm:$0xff]  }
  0xec   :  { %1922 = vmatpush1.bf16.msra.mxu1 %v3393_v8  ;;  %v3449_v8 = vld [vmem:[#allocation2 + $0x66c] ss:$16 sps:$4 sm:$0xff]  }
  0xed   :  { %1923 = vmatprep.subr.bf16.mxu1 %v3398_v31  ;;  %v3452_v31 = vld [vmem:[#allocation2 + $0x68c] ss:$16 sps:$4 sm:$0xff]  }
  0xee   :  { %2416 = vmatpush1.bf16.msra.mxu0 %v3489_v21  ;;  %v3450_v21 = vld [vmem:[#allocation2 + $0x688] ss:$16 sps:$4 sm:$0xff]  }
  0xef   :  { %2417 = vmatprep.subr.bf16.mxu0 %v3494_v22  ;;  %v3455_v22 = vld [vmem:[#allocation2 + $0x6ac] ss:$16 sps:$4 sm:$0xff]  }
  0xf0   :  { %1924 = vmatpush1.bf16.msra.mxu1 %v3396_v32  ;;  %v3458_v32 = vld [vmem:[#allocation2 + $0x6cc] ss:$16 sps:$4 sm:$0xff]  }
  0xf1   :  { %1925 = vmatprep.subr.bf16.mxu1 %v3401_v33 }
  0xf2   :  { %2418 = vmatpush1.bf16.msra.mxu0 %v3492_v9  ;;  %v3530_v9 = vld [vmem:[#allocation4 + $0xe4] ss:$8 sps:$4 sm:$0xff]  }
  0xf3   :  { %2419 = vmatprep.subr.bf16.mxu0 %v3497_v36  ;;  %v3528_v36 = vld [vmem:[#allocation4 + $0xe0] ss:$8 sps:$4 sm:$0xff]  }
  0xf4   :  { %1926 = vmatpush1.bf16.msra.mxu1 %v3399_v34 }
  0xf5   :  { %1927 = vmatprep.subr.bf16.mxu1 %v3404_v35  ;;  %v3456_v35 = vld [vmem:[#allocation2 + $0x6c8] ss:$16 sps:$4 sm:$0xff]  }
  0xf6   :  { %2420 = vmatpush1.bf16.msra.mxu0 %v3495_v38 }
  0xf7   :  { %2421 = vmatprep.subr.bf16.mxu0 %v3500_v55  ;;  %v3461_v55 = vld [vmem:[#allocation2 + $0x6ec] ss:$16 sps:$4 sm:$0xff]  }
  0xf8   :  { %1928 = vmatpush1.bf16.msra.mxu1 %v3402_v37  ;;  %v3533_v37 = vld [vmem:[#allocation4 + $0xf4] ss:$8 sps:$4 sm:$0xff]  }
  0xf9   :  { %1929 = vmatprep.subr.bf16.mxu1 %v3407_v39  ;;  %v3459_v39 = vld [vmem:[#allocation2 + $0x6e8] ss:$16 sps:$4 sm:$0xff]  }
  0xfa   :  { %2422 = vmatpush1.bf16.msra.mxu0 %v3498_v40  ;;  %v3531_v40 = vld [vmem:[#allocation4 + $0xf0] ss:$8 sps:$4 sm:$0xff]  }
  0xfb   :  { %2423 = vmatprep.subr.bf16.mxu0 %v3503_v41  ;;  %v3464_v41 = vld [vmem:[#allocation2 + $0x70c] ss:$16 sps:$4 sm:$0xff]  }
  0xfc   :  { %1930 = vmatpush1.bf16.msra.mxu1 %v3405_v42  ;;  %v3462_v42 = vld [vmem:[#allocation2 + $0x708] ss:$16 sps:$4 sm:$0xff]  }
  0xfd   :  { %1931 = vmatprep.subr.bf16.mxu1 %v3410_v43  ;;  %v3467_v43 = vld [vmem:[#allocation2 + $0x72c] ss:$16 sps:$4 sm:$0xff]  }
  0xfe   :  { %2424 = vmatpush1.bf16.msra.mxu0 %v3501_v44  ;;  %v3536_v44 = vld [vmem:[#allocation4 + $0x104] ss:$8 sps:$4 sm:$0xff]  }
  0xff   :  { %2425 = vmatprep.subr.bf16.mxu0 %v3506_v45  ;;  %v3465_v45 = vld [vmem:[#allocation2 + $0x728] ss:$16 sps:$4 sm:$0xff]  }
 0x100   :  { %1932 = vmatpush1.bf16.msra.mxu1 %v3408_v46  ;;  %v3470_v46 = vld [vmem:[#allocation2 + $0x74c] ss:$16 sps:$4 sm:$0xff]  }
 0x101   :  { %1933 = vmatprep.subr.bf16.mxu1 %v3413_v47  ;;  %v3468_v47 = vld [vmem:[#allocation2 + $0x748] ss:$16 sps:$4 sm:$0xff]  }
 0x102   :  { %2426 = vmatpush1.bf16.msra.mxu0 %v3504_v48  ;;  %v3473_v48 = vld [vmem:[#allocation2 + $0x76c] ss:$16 sps:$4 sm:$0xff]  }
 0x103   :  { %2427 = vmatprep.subr.bf16.mxu0 %v3509_v49  ;;  %v3471_v49 = vld [vmem:[#allocation2 + $0x768] ss:$16 sps:$4 sm:$0xff]  }
 0x104   :  { %1934 = vmatpush1.bf16.msra.mxu1 %v3411_v50  ;;  %v3476_v50 = vld [vmem:[#allocation2 + $0x78c] ss:$16 sps:$4 sm:$0xff]  }
 0x105   :  { %1935 = vmatprep.subr.bf16.mxu1 %v3416_v51  ;;  %v3474_v51 = vld [vmem:[#allocation2 + $0x788] ss:$16 sps:$4 sm:$0xff]  }
 0x106   :  { %2428 = vmatpush1.bf16.msra.mxu0 %v3507_v52  ;;  %v3479_v52 = vld [vmem:[#allocation2 + $0x7ac] ss:$16 sps:$4 sm:$0xff]  }
 0x107   :  { %2429 = vmatprep.subr.bf16.mxu0 %v3512_v53  ;;  %v3477_v53 = vld [vmem:[#allocation2 + $0x7a8] ss:$16 sps:$4 sm:$0xff]  }
 0x108   :  { %1936 = vmatpush1.bf16.msra.mxu1 %v3414_v54  ;;  %v3482_v54 = vld [vmem:[#allocation2 + $0x7cc] ss:$16 sps:$4 sm:$0xff]  }
 0x109   :  { %1937 = vmatprep.subr.bf16.mxu1 %v3419_v56  ;;  %v3480_v56 = vld [vmem:[#allocation2 + $0x7c8] ss:$16 sps:$4 sm:$0xff]  }
 0x10a   :  { %2430 = vmatpush1.bf16.msra.mxu0 %v3510_v57  ;;  %v3485_v57 = vld [vmem:[#allocation2 + $0x7ec] ss:$16 sps:$4 sm:$0xff]  }
 0x10b   :  { %2431 = vmatprep.subr.bf16.mxu0 %v3515_v58  ;;  %v3483_v58 = vld [vmem:[#allocation2 + $0x7e8] ss:$16 sps:$4 sm:$0xff]  }
 0x10c   :  { %1938 = vmatpush1.bf16.msra.mxu1 %v3417_v59  ;;  %v321_v59 = vlaneseq }
 0x10d   :  { %1939 = vmatprep.subr.bf16.mxu1 %v3422_v60 }
 0x10e   :  { %2432 = vmatpush1.bf16.msra.mxu0 %v3513_v61  ;;  %v3784_v60 = vshrl.u32 %v321_v59, 7  ;;  %v3576_v59 = vld [vmem:[#allocation4 + $0x1e0] ss:$8 sps:$4 sm:$0xff]  }
 0x10f   :  { %2433 = vmatprep.subr.bf16.mxu0 %v3518_v62  ;;  %v3790_v62 = vld [vmem:[%s3869_s2] sm:$0xf] }
 0x110   :  { %1940 = vmatpush1.bf16.msra.mxu1 %v3420_v63  ;;  %v323_v61 = vsub.s32 0, %v3784_v60  ;;  %v327_v63 = vsub.s32 1, %v3784_v60 }
 0x111   :  { %1941 = vmatprep.subr.bf16.mxu1 %v3425_v0 }
 0x112   :  { %2434 = vmatpush1.bf16.msra.mxu0 %v3516_v1  ;;  %v324_v0 = vrot.slane %v3790_v62, %v323_v61 }
 0x113   :  { %2435 = vmatprep.subr.bf16.mxu0 %v3521_v2 }
 0x114   :  { %1942 = vmatpush1.bf16.msra.mxu1 %v3423_v3 }
 0x115   :  { %1943 = vmatprep.subr.bf16.mxu1 %v3428_v4 }
 0x116   :  { %2436 = vmatpush1.bf16.msra.mxu0 %v3519_v5 }
 0x117   :  { %2437 = vmatprep.subr.bf16.mxu0 %v3524_v6 }
 0x118   :  { %1944 = vmatpush1.bf16.msra.mxu1 %v3426_v7 }
 0x119   :  { %1945 = vmatprep.subr.bf16.mxu1 %v3431_v10 }
 0x11a   :  { %2438 = vmatpush1.bf16.msra.mxu0 %v3522_v11 }
 0x11b   :  { %2439 = vmatprep.subr.bf16.mxu0 %v3527_v12 }
 0x11c   :  { %1946 = vmatpush1.bf16.msra.mxu1 %v3429_v13 }
 0x11d   :  { %1947 = vmatprep.subr.bf16.mxu1 %v3434_v14 }
 0x11e   :  { %2440 = vmatpush1.bf16.msra.mxu0 %v3525_v15 }
 0x11f   :  { %2441 = vmatprep.subr.bf16.mxu0 %v3530_v9  ;;  %v3543_v9 = vld [vmem:[#allocation4 + $0x130] ss:$8 sps:$4 sm:$0xff]  }
 0x120   :  { %1948 = vmatpush1.bf16.msra.mxu1 %v3432_v17 }
 0x121   :  { %1949 = vmatprep.subr.bf16.mxu1 %v3437_v18 }
 0x122   :  { %2442 = vmatpush1.bf16.msra.mxu0 %v3528_v36  ;;  %v3590_v36 = vld [vmem:[%s3872_s5 + $0x60] sm:$0xff]  }
 0x123   :  { %2443 = vmatprep.subr.bf16.mxu0 %v3533_v37  ;;  %v3591_v37 = vld [vmem:[%s3872_s5 + $0x20] sm:$0xff]  }
 0x124   :  { %1950 = vmatpush1.bf16.msra.mxu1 %v3435_v19 }
 0x125   :  { %1962 = vmatprep.subr.bf16.mxu1 %v3440_v20 }
 0x126   :  { %2444 = vmatpush1.bf16.msra.mxu0 %v3531_v40  ;;  %v3549_v40 = vld [vmem:[#allocation4 + $0x150] ss:$8 sps:$4 sm:$0xff]  }
 0x127   :  { %1952 = vmatmul.mubr.bf16.vlgmr.msra.gmra.mrb[4].mxu1 %v3754_v16  ;;  %v3453_v16 = vld [vmem:[#allocation2 + $0x6a8] ss:$16 sps:$4 sm:$0xff]   ;;  %2456 = vmatprep.subr.bf16.mxu0 %v3536_v44 }
 0x128   :  { %1963 = vmatpush1.bf16.msra.mxu1 %v3438_v23  ;;  %1994 = vmatprep.mubr.bf16.mxu1 %v3770_v25  ;;  %v3555_v44 = vld [vmem:[#allocation4 + $0x170] ss:$8 sps:$4 sm:$0xff]  }
 0x129   :  { %1964 = vmatprep.subr.bf16.mxu1 %v3443_v24  ;;  %v3534_v24 = vld [vmem:[#allocation4 + $0x100] ss:$8 sps:$4 sm:$0xff]  }
 0x12c   :  { %1965 = vmatpush1.bf16.msra.mxu1 %v3441_v27  ;;  %v3539_v27 = vld [vmem:[#allocation4 + $0x114] ss:$8 sps:$4 sm:$0xff]  }
 0x12d   :  { %1966 = vmatprep.subr.bf16.mxu1 %v3446_v28  ;;  %v3582_v28 = vld [vmem:[%s3872_s5 + $0x40] sm:$0xff]  }
 0x130   :  { %1967 = vmatpush1.bf16.msra.mxu1 %v3444_v29  ;;  %v3583_v29 = vld [vmem:[%s3872_s5] sm:$0xff]  }
 0x131   :  { %1968 = vmatprep.subr.bf16.mxu1 %v3449_v8  ;;  %v3584_v8 = vld [vmem:[%s3872_s5 + $0x48] sm:$0xff]  }
 0x134   :  { %1969 = vmatpush1.bf16.msra.mxu1 %v3447_v30  ;;  %v3537_v30 = vld [vmem:[#allocation4 + $0x110] ss:$8 sps:$4 sm:$0xff]  }
 0x135   :  { %1970 = vmatprep.subr.bf16.mxu1 %v3452_v31  ;;  %v3542_v31 = vld [vmem:[#allocation4 + $0x124] ss:$8 sps:$4 sm:$0xff]  }
 0x138   :  { %1971 = vmatpush1.bf16.msra.mxu1 %v3450_v21  ;;  %v3585_v21 = vld [vmem:[%s3872_s5 + $0x8] sm:$0xff]  }
 0x139   :  { %1972 = vmatprep.subr.bf16.mxu1 %v3455_v22  ;;  %v3586_v22 = vld [vmem:[%s3872_s5 + $0x50] sm:$0xff]  }
 0x13a   :  { %v1695_v33 = vpop.f32.mrb[0].mxu1 }
 0x13b   :  { %v1697_v25 = vpop.f32.mrb[1].mxu1  ;;  %v1696_v1 = vadd.f32 %v1695_v33, %v324_v0  ;;  %v3587_v33 = vld [vmem:[%s3872_s5 + $0x10] sm:$0xff]  }
 0x13c   :  { %v1699_v34 = vpop.f32.mrb[2].mxu1  ;;  %1973 = vmatpush1.bf16.msra.mxu1 %v3453_v16  ;;  %v3540_v16 = vld [vmem:[#allocation4 + $0x120] ss:$8 sps:$4 sm:$0xff]  }
 0x13d   :  { %v1701_v38 = vpop.f32.mrb[3].mxu1  ;;  %1974 = vmatprep.subr.bf16.mxu1 %v3458_v32  ;;  %v1700_v4 = vadd.f32 %v1699_v34, %v324_v0  ;;  %v3545_v32 = vld [vmem:[#allocation4 + $0x134] ss:$8 sps:$4 sm:$0xff]   ;;  %v3548_v34 = vld [vmem:[#allocation4 + $0x144] ss:$8 sps:$4 sm:$0xff]  }
 0x13e   :  { %v3581_v0 = vld [vmem:[#allocation4 + $0x1f4] ss:$8 sps:$4 sm:$0xff]  }
 0x140   :  { %1975 = vmatpush1.bf16.msra.mxu1 %v3456_v35  ;;  %v3589_v35 = vld [vmem:[%s3872_s5 + $0x18] sm:$0xff]  }
 0x141   :  { %1976 = vmatprep.subr.bf16.mxu1 %v3461_v55  ;;  %v3551_v55 = vld [vmem:[#allocation4 + $0x154] ss:$8 sps:$4 sm:$0xff]  }
 0x144   :  { %1977 = vmatpush1.bf16.msra.mxu1 %v3459_v39  ;;  %v3592_v39 = vld [vmem:[%s3872_s5 + $0x68] sm:$0xff]  }
 0x145   :  { %1978 = vmatprep.subr.bf16.mxu1 %v3464_v41  ;;  %v3554_v41 = vld [vmem:[#allocation4 + $0x164] ss:$8 sps:$4 sm:$0xff]  }
 0x148   :  { %1979 = vmatpush1.bf16.msra.mxu1 %v3462_v42  ;;  %v3552_v42 = vld [vmem:[#allocation4 + $0x160] ss:$8 sps:$4 sm:$0xff]  }
 0x149   :  { %1980 = vmatprep.subr.bf16.mxu1 %v3467_v43  ;;  %v3557_v43 = vld [vmem:[#allocation4 + $0x174] ss:$8 sps:$4 sm:$0xff]  }
 0x14c   :  { %1981 = vmatpush1.bf16.msra.mxu1 %v3465_v45  ;;  %v3560_v45 = vld [vmem:[#allocation4 + $0x184] ss:$8 sps:$4 sm:$0xff]  }
 0x14d   :  { %1982 = vmatprep.subr.bf16.mxu1 %v3470_v46  ;;  %v3558_v46 = vld [vmem:[#allocation4 + $0x180] ss:$8 sps:$4 sm:$0xff]  }
 0x150   :  { %1983 = vmatpush1.bf16.msra.mxu1 %v3468_v47  ;;  %v3563_v47 = vld [vmem:[#allocation4 + $0x194] ss:$8 sps:$4 sm:$0xff]  }
 0x151   :  { %1984 = vmatprep.subr.bf16.mxu1 %v3473_v48  ;;  %v3561_v48 = vld [vmem:[#allocation4 + $0x190] ss:$8 sps:$4 sm:$0xff]  }
 0x154   :  { %1985 = vmatpush1.bf16.msra.mxu1 %v3471_v49  ;;  %v3566_v49 = vld [vmem:[#allocation4 + $0x1a4] ss:$8 sps:$4 sm:$0xff]  }
 0x155   :  { %1986 = vmatprep.subr.bf16.mxu1 %v3476_v50  ;;  %v3564_v50 = vld [vmem:[#allocation4 + $0x1a0] ss:$8 sps:$4 sm:$0xff]  }
 0x158   :  { %1987 = vmatpush1.bf16.msra.mxu1 %v3474_v51  ;;  %v3569_v51 = vld [vmem:[#allocation4 + $0x1b4] ss:$8 sps:$4 sm:$0xff]  }
 0x159   :  { %1988 = vmatprep.subr.bf16.mxu1 %v3479_v52  ;;  %v3567_v52 = vld [vmem:[#allocation4 + $0x1b0] ss:$8 sps:$4 sm:$0xff]  }
 0x15c   :  { %1989 = vmatpush1.bf16.msra.mxu1 %v3477_v53  ;;  %v3572_v53 = vld [vmem:[#allocation4 + $0x1c4] ss:$8 sps:$4 sm:$0xff]  }
 0x15d   :  { %1990 = vmatprep.subr.bf16.mxu1 %v3482_v54  ;;  %v3570_v54 = vld [vmem:[#allocation4 + $0x1c0] ss:$8 sps:$4 sm:$0xff]  }
 0x160   :  { %1991 = vmatpush1.bf16.msra.mxu1 %v3480_v56  ;;  %v3575_v56 = vld [vmem:[#allocation4 + $0x1d4] ss:$8 sps:$4 sm:$0xff]  }
 0x161   :  { %1992 = vmatprep.subr.bf16.mxu1 %v3485_v57  ;;  %v3573_v57 = vld [vmem:[#allocation4 + $0x1d0] ss:$8 sps:$4 sm:$0xff]  }
 0x164   :  { %1993 = vmatpush1.bf16.msra.mxu1 %v3483_v58  ;;  %v3578_v58 = vld [vmem:[#allocation4 + $0x1e4] ss:$8 sps:$4 sm:$0xff]  }
 0x165   :  { %3034 = vmatprep.subr.bf16.mxu1 %v3582_v28  ;;  %v3596_v28 = vld [vmem:[%s3872_s5 + $0x78] sm:$0xff]  }
 0x167   :  { %1995 = vmatmul.mubr.bf16.vlgmr.msra.gmra.mrb[4].mxu1 %v3776_v26  ;;  %v328_v26 = vrot.slane %v3790_v62, %v327_v63 }
 0x168   :  { %3035 = vmatpush3.bf16.msra.mxu1 %v3583_v29  ;;  %v3597_v29 = vld [vmem:[%s3872_s5 + $0x38] sm:$0xff]  }
 0x169   :  { %v1698_v2 = vadd.f32 %v1697_v25, %v328_v26  ;;  %v1702_v7 = vadd.f32 %v1701_v38, %v328_v26  ;;  %3036 = vmatprep.subr.bf16.mxu1 %v3584_v8  ;;  %v3588_v25 = vld [vmem:[%s3872_s5 + $0x58] sm:$0xff]   ;;  %v3546_v38 = vld [vmem:[#allocation4 + $0x140] ss:$8 sps:$4 sm:$0xff]  }
 0x16a   :  { %v3579_v26 = vld [vmem:[#allocation4 + $0x1f0] ss:$8 sps:$4 sm:$0xff]   ;;  %v2081_v8 = vld [vmem:[%s3871_s4] sm:$0x3] }
 0x16c   :  { %3037 = vmatpush3.bf16.msra.mxu1 %v3585_v21 }
 0x16d   :  { %3038 = vmatprep.subr.bf16.mxu1 %v3586_v22 }
 0x170   :  { %3039 = vmatpush3.bf16.msra.mxu1 %v3587_v33 }
 0x171   :  { %3040 = vmatprep.subr.bf16.mxu1 %v3588_v25 }
 0x174   :  { %3041 = vmatpush3.bf16.msra.mxu1 %v3589_v35 }
 0x175   :  { %3042 = vmatprep.subr.bf16.mxu1 %v3590_v36 }
 0x178   :  { %3043 = vmatpush3.bf16.msra.mxu1 %v3591_v37 }
 0x179   :  { %3044 = vmatprep.subr.bf16.mxu1 %v3592_v39 }
 0x1bb   :  { %v1824_v3 = vpop.f32.mrb[0].mxu0 }
 0x1bc   :  { %v3057_v5 = vadd.f32 %v1824_v3, %v1696_v1  ;;  %v1826_v6 = vpop.f32.mrb[1].mxu0  ;;  %v331_v1 = vsub.s32 2, %v3784_v60 }
 0x1bd   :  { %v3059_v10 = vadd.f32 %v1826_v6, %v1698_v2  ;;  %v1828_v11 = vpop.f32.mrb[2].mxu0  ;;  %v335_v2 = vsub.s32 3, %v3784_v60  ;;  %v3017_v60 = vld [vmem:[%s3873_s6] ss:$0 sm:$0xff] }
 0x1be   :  { %v3061_v12 = vadd.f32 %v1828_v11, %v1700_v4  ;;  %v1830_v13 = vpop.f32.mrb[3].mxu0  ;;  %v2005_v15 = vmax.f32 %v3057_v5, 0.0  ;;  %v332_v3 = vrot.slane %v3790_v62, %v331_v1 }
 0x1bf   :  { %v3063_v14 = vadd.f32 %v1830_v13, %v1702_v7  ;;  %v2006_v18 = vmax.f32 %v3059_v10, 0.0  ;;  %v336_v4 = vrot.slane %v3790_v62, %v335_v2  ;;  %v3593_v62 = vld [vmem:[%s3872_s5 + $0x28] sm:$0xff]  }
 0x1c0   :  { %v2009_v17 = vmax.f32 %v3061_v12, 0.0  ;;  %3045 = vmatpush3.bf16.msra.mxu1 %v3593_v62 }
 0x1c1   :  { %v2010_v19 = vmax.f32 %v3063_v14, 0.0 }
 0x1c2   :  { %v2013_v20 = vpack.c.bf16 %v2009_v17, %v2005_v15 }
 0x1c3   :  { %v2014_v23 = vpack.c.bf16 %v2010_v19, %v2006_v18 }
 0x1c5   :  { %2445 = vmatprep.mubr.bf16.mxu0 %v2014_v23 }
 0x1c6   :  { %2446 = vmatmul.mubr.bf16.vlgmr.msra.gmra.mrb[4].mxu0 %v2013_v20 }
 0x1c7   :  { %2457 = vmatpush1.bf16.msra.mxu0 %v3534_v24  ;;  %v3594_v24 = vld [vmem:[%s3872_s5 + $0x70] sm:$0xff]  }
 0x1c8   :  { %2458 = vmatprep.subr.bf16.mxu0 %v3539_v27  ;;  %v3595_v27 = vld [vmem:[%s3872_s5 + $0x30] sm:$0xff]   ;;  %3046 = vmatprep.subr.bf16.mxu1 %v3594_v24 }
 0x1c9   :  { %3047 = vmatpush3.bf16.msra.mxu1 %v3595_v27 }
 0x1ca   :  { %3048 = vmatprep.subr.bf16.mxu1 %v3596_v28 }
 0x1cb   :  { %2459 = vmatpush1.bf16.msra.mxu0 %v3537_v30  ;;  %v2086_v30 = vrot.slane %v2081_v8, %v323_v61 }
 0x1cc   :  { %2460 = vmatprep.subr.bf16.mxu0 %v3542_v31  ;;  %v2090_v31 = vrot.slane %v2081_v8, %v327_v63 }
 0x1cd   :  { %3049 = vmatpush3.bf16.msra.mxu1 %v3597_v29 }
 0x1cf   :  { %2461 = vmatpush1.bf16.msra.mxu0 %v3540_v16 }
 0x1d0   :  { %2462 = vmatprep.subr.bf16.mxu0 %v3545_v32 }
 0x1d3   :  { %2463 = vmatpush1.bf16.msra.mxu0 %v3543_v9 }
 0x1d4   :  { %2464 = vmatprep.subr.bf16.mxu0 %v3548_v34 }
 0x1d7   :  { %2465 = vmatpush1.bf16.msra.mxu0 %v3546_v38 }
 0x1d8   :  { %2466 = vmatprep.subr.bf16.mxu0 %v3551_v55 }
 0x1db   :  { %2467 = vmatpush1.bf16.msra.mxu0 %v3549_v40 }
 0x1dc   :  { %2468 = vmatprep.subr.bf16.mxu0 %v3554_v41 }
 0x1df   :  { %2469 = vmatpush1.bf16.msra.mxu0 %v3552_v42 }
 0x1e0   :  { %2470 = vmatprep.subr.bf16.mxu0 %v3557_v43 }
 0x1e3   :  { %2471 = vmatpush1.bf16.msra.mxu0 %v3555_v44 }
 0x1e4   :  { %2472 = vmatprep.subr.bf16.mxu0 %v3560_v45 }
 0x1e7   :  { %2473 = vmatpush1.bf16.msra.mxu0 %v3558_v46 }
 0x1e8   :  { %2474 = vmatprep.subr.bf16.mxu0 %v3563_v47 }
 0x1eb   :  { %2475 = vmatpush1.bf16.msra.mxu0 %v3561_v48 }
 0x1ec   :  { %2476 = vmatprep.subr.bf16.mxu0 %v3566_v49 }
 0x1ef   :  { %2477 = vmatpush1.bf16.msra.mxu0 %v3564_v50 }
 0x1f0   :  { %2478 = vmatprep.subr.bf16.mxu0 %v3569_v51 }
 0x1f3   :  { %2479 = vmatpush1.bf16.msra.mxu0 %v3567_v52 }
 0x1f4   :  { %2480 = vmatprep.subr.bf16.mxu0 %v3572_v53 }
 0x1f7   :  { %2481 = vmatpush1.bf16.msra.mxu0 %v3570_v54 }
 0x1f8   :  { %2482 = vmatprep.subr.bf16.mxu0 %v3575_v56 }
 0x1fb   :  { %2483 = vmatpush1.bf16.msra.mxu0 %v3573_v57 }
 0x1fc   :  { %2484 = vmatprep.subr.bf16.mxu0 %v3578_v58 }
 0x1ff   :  { %2485 = vmatpush1.bf16.msra.mxu0 %v3576_v59 }
 0x200   :  { %2486 = vmatprep.subr.bf16.mxu0 %v3581_v0 }
 0x203   :  { %2487 = vmatpush1.bf16.msra.mxu0 %v3579_v26 }
 0x23a   :  { %v1996_v5 = vpop.f32.mrb[4].mxu1 }
 0x23b   :  { %v3064_v6 = vadd.f32 %v1996_v5, %v332_v3  ;;  %v1998_v7 = vpop.f32.mrb[5].mxu1 }
 0x23c   :  { %v3065_v10 = vadd.f32 %v1998_v7, %v336_v4  ;;  %v2000_v11 = vpop.f32.mrb[6].mxu1 }
 0x23d   :  { %v3066_v12 = vadd.f32 %v2000_v11, %v332_v3  ;;  %v2002_v13 = vpop.f32.mrb[7].mxu1  ;;  %v2007_v15 = vmax.f32 %v3064_v6, 0.0 }
 0x23e   :  { %v3067_v14 = vadd.f32 %v2002_v13, %v336_v4  ;;  %v2008_v18 = vmax.f32 %v3065_v10, 0.0 }
 0x23f   :  { %v2011_v17 = vmax.f32 %v3066_v12, 0.0 }
 0x240   :  { %v2012_v19 = vmax.f32 %v3067_v14, 0.0 }
 0x241   :  { %v2015_v20 = vpack.c.bf16 %v2011_v17, %v2007_v15 }
 0x242   :  { %v2016_v23 = vpack.c.bf16 %v2012_v19, %v2008_v18 }
 0x244   :  { %2488 = vmatprep.mubr.bf16.mxu0 %v2016_v23 }
 0x245   :  { %2489 = vmatmul.mubr.bf16.vlgmr.msra.gmra.mrb[4].mxu0 %v2015_v20 }
 0x318   :  { %v2490_v21 = vpop.f32.mrb[4].mxu0 }
 0x319   :  { %v3068_v22 = vadd.f32 %v2490_v21, %v2086_v30  ;;  %v2492_v16 = vpop.f32.mrb[5].mxu0 }
 0x31a   :  { %v3069_v32 = vadd.f32 %v2492_v16, %v2090_v31  ;;  %v2494_v33 = vpop.f32.mrb[6].mxu0 }
 0x31b   :  { %v3070_v25 = vadd.f32 %v2494_v33, %v2086_v30  ;;  %v2496_v9 = vpop.f32.mrb[7].mxu0  ;;  %v2499_v35 = vmax.f32 %v3068_v22, 0.0 }
 0x31c   :  { %v3071_v34 = vadd.f32 %v2496_v9, %v2090_v31  ;;  %v2500_v38 = vmax.f32 %v3069_v32, 0.0 }
 0x31d   :  { %v2501_v36 = vmax.f32 %v3070_v25, 0.0 }
 0x31e   :  { %v2502_v55 = vmax.f32 %v3071_v34, 0.0 }
 0x31f   :  { %v2503_v37 = vpack.c.bf16 %v2501_v36, %v2499_v35 }
 0x320   :  { %v2504_v39 = vpack.c.bf16 %v2502_v55, %v2500_v38 }
 0x322   :  { %2672 = vmatprep.mubr.bf16.mxu1 %v2504_v39 }
 0x323   :  { %2673 = vmatmul.mubr.bf16.vlgmr.msra.gmra.mrb[8].mxu1 %v2503_v37 }
 0x3f6   :  { %v3050_v61 = vpop.f32.mrb[8].mxu1 }
 0x3f7   :  { %v3051_v63 = vpop.f32.mrb[9].mxu1 }
 0x3f8   :  { %v3052_v40 = vadd.f32 %v3051_v63, %v3050_v61  ;;  %v3053_v41 = vpop.f32.mrb[10].mxu1 }
 0x3f9   :  { %v3054_v42 = vpop.f32.mrb[11].mxu1 }
 0x3fa   :  { %v2675_v43 = vadd.f32 %v3052_v40, %v3017_v60  ;;  %v3055_v44 = vadd.f32 %v3054_v42, %v3053_v41 }
 0x3fc   :  { %2681 = vst [vmem:[%s3874_s7] sm:$0xff] %v2675_v43  ;;  %v2678_v45 = vadd.f32 %v3055_v44, %v3017_v60 }
 0x3fe   :  { %2682 = vst [vmem:[%s3874_s7 + $0x8] sm:$0xff] %v2678_v45 }
 0x3ff   :  { %2687 = vsyncpa [#allocation3], 1 }
 0x400   :  { %2688 = vsyncpa [#allocation5], 1 }

</bundles_post_ra>
